<compile_context>
chip_gen: v7x
topology: tpu7x:2x2x1
jax: 0.10.0
libtpu: 0.0.40
codegen_flags: <defaults>
</compile_context>

<pallas_src>
import functools

import jax
import jax.numpy as jnp
from jax.experimental import pallas as pl
from jax.experimental.pallas import tpu as pltpu

LANE = 128
HIGH = jax.lax.Precision.HIGHEST  # for the plain-JAX references only


def _round_up(n, m):
    return ((n + m - 1) // m) * m


# ---------------------------------------------------------------------------
# Fused Pallas kernel: conv branches + max-pool-over-H + bias + FC, one call.
# ---------------------------------------------------------------------------
def textcnn_kernel(x_ref, wconv_ref, bconv_ref, wfc_ref, bfc_ref, out_ref,
                   *, kernel_sizes, batch_tile, height, f_pad):
    # x_ref:     (Bt*H, CWp)        bf16  one row per (b, h); C*W flattened, 16-aligned pad
    # wconv_ref: (CWp, sum(k)*Fp)   bf16  one 128-lane column block per (branch, kernel-row)
    # bconv_ref: (1, NB*Fp)         f32   conv biases (zero padded per branch block)
    # wfc_ref:   (NB*Fp, Op)        bf16  FC weight, rows matching pooled layout
    # bfc_ref:   (1, Op)            f32
    # out_ref:   (Bt, Op)           f32
    xv = x_ref[...]  # stays resident for all (branch, kernel-row) dots

    pooled_parts = []
    col = 0
    for k in kernel_sizes:
        P = height - k + 1
        s = None
        for dk in range(k):
            c0 = (col + dk) * f_pad
            # (Bt*H, CWp) x (CWp, Fp) on the MXU, f32 accumulation. Small per-block
            # result (<= 64 KiB at Bt=8) -> no big-intermediate spill.
            y = jnp.dot(xv, wconv_ref[:, c0:c0 + f_pad],
                        preferred_element_type=jnp.float32)
            y = y.reshape(batch_tile, height, f_pad)[:, dk:dk + P, :]
            s = y if s is None else s + y                 # f32 shifted adds (valid conv)
        pooled_parts.append(jnp.max(s, axis=1))           # (Bt, Fp) max over positions
        col += k

    pooled = jnp.concatenate(pooled_parts, axis=-1)       # (Bt, NB*Fp), f32
    # Bias after max is exact ONLY because the bias is a per-filter constant.
    pooled = pooled + bconv_ref[...]

    # Dropout is identity at inference time.
    # TODO(synk): training-mode stochastic dropout mask not implemented.
    out_ref[...] = (
        jnp.dot(pooled.astype(jnp.bfloat16), wfc_ref[...],
                preferred_element_type=jnp.float32)
        + bfc_ref[...]
    )


# ---------------------------------------------------------------------------
# Host-side one-time parameter packing (bf16 weights, lane-dense layout).
# ---------------------------------------------------------------------------
def pack_params(params, kernel_sizes, in_channels, emb, n_filters, out_channels):
    CW = in_channels * emb
    CWp = _round_up(CW, 16)          # contraction dim: sublane/bf16-packing alignment only
    Fp = _round_up(n_filters, LANE)  # filter blocks stay 128-lane dense
    Op = _round_up(out_channels, LANE)
    NB = len(kernel_sizes)
    TK = sum(kernel_sizes)

    wconv = jnp.zeros((CWp, TK * Fp), jnp.float32)
    bconv = jnp.zeros((1, NB * Fp), jnp.float32)
    col = 0
    for i, ((w, b), k) in enumerate(zip(params["convs"], kernel_sizes)):
        for dk in range(k):
            # (F, C, W) slice -> (C*W, F), matching the x slab's c*W + w flatten order.
            wdk = w[:, :, dk, :].reshape(n_filters, CW).T
            wconv = wconv.at[:CW, col * Fp:col * Fp + n_filters].set(wdk)
            col += 1
        bconv = bconv.at[0, i * Fp:i * Fp + n_filters].set(b)

    wfc = jnp.zeros((NB * Fp, Op), jnp.float32)
    for i in range(NB):
        blk = params["fc_w"][:, i * n_filters:(i + 1) * n_filters].T  # (F, O)
        wfc = wfc.at[i * Fp:i * Fp + n_filters, :out_channels].set(blk)
    bfc = jnp.zeros((1, Op), jnp.float32).at[0, :out_channels].set(params["fc_b"])

    # bf16 weights in HBM: halves the dominant DMA; dots still accumulate in f32.
    return wconv.astype(jnp.bfloat16), bconv, wfc.astype(jnp.bfloat16), bfc


# ---------------------------------------------------------------------------
# pallas_call wrapper.
# ---------------------------------------------------------------------------
def textcnn_forward(packed, x, kernel_sizes, out_channels, *, max_batch_tile=128):
    wconv, bconv, wfc, bfc = packed
    B, C, H, W = x.shape
    CW = C * W
    CWp = wconv.shape[0]
    NB = len(kernel_sizes)
    Fp = bconv.shape[1] // NB
    Op = wfc.shape[1]

    # Batch tile: multiple of 8 (unmasked, sublane-full output stores). Cap keeps
    # per-tile VMEM small even on v7x (64 MiB physical / 32 MiB default scoped)
    # while giving M = Bt*H >= 256 to fill the 256-wide MXU at large batch.
    Bt = min(_round_up(B, 8), max_batch_tile)
    Bp = _round_up(B, Bt)
    n_tiles = Bp // Bt

    # x -> (Bp*H, C*W) slab, zero-padded to CWp lanes, bf16.  No im2col duplication.
    xp = jnp.pad(x, ((0, Bp - B), (0, 0), (0, 0), (0, 0)))
    x_slab = jnp.transpose(xp, (0, 2, 1, 3)).reshape(Bp * H, CW)
    x_slab = jnp.pad(x_slab, ((0, 0), (0, CWp - CW))).astype(jnp.bfloat16)

    kernel = functools.partial(
        textcnn_kernel,
        kernel_sizes=tuple(kernel_sizes), batch_tile=Bt, height=H, f_pad=Fp)

    flops = 2 * Bp * H * CWp * wconv.shape[1] + 2 * Bp * wfc.shape[0] * Op
    bytes_accessed = (2 * (x_slab.size + wconv.size + wfc.size)
                      + 4 * (bconv.size + bfc.size + Bp * Op))

    out = pl.pallas_call(
        kernel,
        out_shape=jax.ShapeDtypeStruct((Bp, Op), jnp.float32),
        grid=(n_tiles,),
        in_specs=[
            pl.BlockSpec((Bt * H, CWp), lambda i: (i, 0)),   # batch-tiled activations
            pl.BlockSpec(wconv.shape, lambda i: (0, 0)),     # weights: VMEM-resident
            pl.BlockSpec(bconv.shape, lambda i: (0, 0)),
            pl.BlockSpec(wfc.shape, lambda i: (0, 0)),
            pl.BlockSpec(bfc.shape, lambda i: (0, 0)),
        ],
        out_specs=pl.BlockSpec((Bt, Op), lambda i: (i, 0)),
        compiler_params=pltpu.CompilerParams(
            dimension_semantics=("parallel",),               # v7x 2-TC sharding at large B
            vmem_limit_bytes=32 * 1024 * 1024),              # sized for the smallest (v7x) part
        cost_estimate=pl.CostEstimate(
            flops=flops, transcendentals=0, bytes_accessed=bytes_accessed),
    )(x_slab, wconv, bconv, wfc, bfc)
    return out[:B, :out_channels]


# ---------------------------------------------------------------------------
# Deterministic parameter init (matches the PyTorch module's init scheme).
# ---------------------------------------------------------------------------
def init_params(key, in_channels, out_channels, kernel_sizes, emb=50, n_filters=50):
    """Kaiming-normal weights (fan_in, gain=sqrt(2)) + PyTorch-style uniform biases."""
    params = {"convs": []}
    for k in kernel_sizes:
        key, wk, bk = jax.random.split(key, 3)
        fan_in = in_channels * k * emb
        w = jax.random.normal(wk, (n_filters, in_channels, k, emb), jnp.float32)
        w = w * jnp.sqrt(2.0 / fan_in)
        bound = 1.0 / jnp.sqrt(jnp.float32(fan_in))
        b = jax.random.uniform(bk, (n_filters,), jnp.float32, -bound, bound)
        params["convs"].append((w, b))
    key, wk, bk = jax.random.split(key, 3)
    fan_in = len(kernel_sizes) * n_filters
    params["fc_w"] = (
        jax.random.normal(wk, (out_channels, fan_in), jnp.float32)
        * jnp.sqrt(2.0 / fan_in)
    )
    bound = 1.0 / jnp.sqrt(jnp.float32(fan_in))
    params["fc_b"] = jax.random.uniform(bk, (out_channels,), jnp.float32, -bound, bound)
    return params


# ---------------------------------------------------------------------------
# Plain-JAX references for the numerical self-check.
# ---------------------------------------------------------------------------
def textcnn_reference(params, x, kernel_sizes):
    """Full-f32 math, mirrors the PyTorch forward (conv+bias, max over H, FC)."""
    B, C, H, W = x.shape
    pooled = []
    for (w, b), k in zip(params["convs"], kernel_sizes):
        P = H - k + 1
        s = None
        for dk in range(k):
            y = jnp.einsum("bchw,fcw->bhf", x, w[:, :, dk, :],
                           precision=HIGH)[:, dk:dk + P, :]
            s = y if s is None else s + y
        pooled.append(jnp.max(s + 0.0, axis=1) + b[None, :])
    feats = jnp.concatenate(pooled, axis=1)
    return jnp.dot(feats, params["fc_w"].T, precision=HIGH) + params["fc_b"]


def textcnn_reference_bf16(params, x, kernel_sizes):
    """Mirrors the kernel's bf16 quantization (x, weights, pooled) for a tight check."""
    q = lambda a: a.astype(jnp.bfloat16).astype(jnp.float32)
    B, C, H, W = x.shape
    xq = q(x)
    pooled = []
    for (w, b), k in zip(params["convs"], kernel_sizes):
        P = H - k + 1
        s = None
        for dk in range(k):
            y = jnp.einsum("bchw,fcw->bhf", xq, q(w[:, :, dk, :]),
                           precision=HIGH)[:, dk:dk + P, :]
            s = y if s is None else s + y
        pooled.append(jnp.max(s, axis=1) + b[None, :])
    feats = q(jnp.concatenate(pooled, axis=1))
    return jnp.dot(feats, q(params["fc_w"]).T, precision=HIGH) + params["fc_b"]


if __name__ == "__main__":
    kernel_sizes = (3, 4, 5)
    in_channels, out_channels = 1, 8
    B, H, W = 2, 16, 50   # W must equal 50: conv kernels are (k, 50) and fc expects 3*50 feats

    key = jax.random.PRNGKey(0)
    kp, kx = jax.random.split(key)
    params = init_params(kp, in_channels, out_channels, kernel_sizes)
    x = jax.random.normal(kx, (B, in_channels, H, W), jnp.float32)

    packed = pack_params(params, kernel_sizes, in_channels, 50, 50, out_channels)
    out = textcnn_forward(packed, x, kernel_sizes, out_channels)
    jax.block_until_ready(out)

    assert out.shape == (B, out_channels) and out.dtype == jnp.float32

    # Tight check vs a reference that mirrors the kernel's bf16 quantization
    # (catches packing/indexing/layout bugs).
    ref_q = textcnn_reference_bf16(params, x, kernel_sizes)
    assert float(jnp.max(jnp.abs(out - ref_q))) < 5e-3, "mismatch vs bf16-mirroring reference"

    # Looser check vs the full-f32 PyTorch-equivalent math (gap = intentional bf16 weights).
    ref = textcnn_reference(params, x, kernel_sizes)
    assert float(jnp.max(jnp.abs(out - ref))) < 8e-2, "mismatch vs f32 reference"

    print("KERNEL_OK")
</pallas_src>

<mosaic_0001>
module attributes {stable_mosaic.version = 11 : i64} {
  func.func @textcnn_kernel(%arg0: i32, %arg1: memref<128x64xbf16, #tpu.memory_space<vmem>>, %arg2: memref<64x1536xbf16, #tpu.memory_space<vmem>>, %arg3: memref<1x384xf32, #tpu.memory_space<vmem>>, %arg4: memref<384x128xbf16, #tpu.memory_space<vmem>>, %arg5: memref<1x128xf32, #tpu.memory_space<vmem>>, %arg6: memref<8x128xf32, #tpu.memory_space<vmem>>) attributes {dimension_semantics = [#tpu.dimension_semantics<parallel>], iteration_bounds = array<i64: 1>, scalar_prefetch = 0 : i64, scratch_operands = 0 : i64, tpu.core_type = #tpu.core_type<tc>, window_params = [{transform_indices = @transform_0, window_bounds = array<i64: 128, 64>}, {pipeline_mode = #tpu.pipeline_mode<synchronous>, transform_indices = @transform_1, window_bounds = array<i64: 64, 1536>}, {pipeline_mode = #tpu.pipeline_mode<synchronous>, transform_indices = @transform_2, window_bounds = array<i64: 1, 384>}, {pipeline_mode = #tpu.pipeline_mode<synchronous>, transform_indices = @transform_3, window_bounds = array<i64: 384, 128>}, {pipeline_mode = #tpu.pipeline_mode<synchronous>, transform_indices = @transform_4, window_bounds = array<i64: 1, 128>}, {transform_indices = @transform_5, window_bounds = array<i64: 8, 128>}]} {
    %c0 = arith.constant 0 : index
    %c0_0 = arith.constant 0 : index
    %0 = vector.load %arg1[%c0, %c0_0] : memref<128x64xbf16, #tpu.memory_space<vmem>>, vector<128x64xbf16>
    %c0_1 = arith.constant 0 : index
    %c0_2 = arith.constant 0 : index
    %1 = vector.load %arg2[%c0_1, %c0_2] : memref<64x1536xbf16, #tpu.memory_space<vmem>>, vector<64x128xbf16>
    %cst = arith.constant dense<0.000000e+00> : vector<128x128xf32>
    %2 = tpu.matmul %0, %1, %cst {dimension_numbers = #tpu.dot_dimension_numbers<[1], [0], [0], [1], [0, 0, 1, 1], [], []>} : vector<128x64xbf16>, vector<64x128xbf16>, vector<128x128xf32> -> vector<128x128xf32>
    %3 = vector.shape_cast %2 : vector<128x128xf32> to vector<8x16x128xf32>
    %4 = vector.extract_strided_slice %3 {offsets = [0, 0, 0], sizes = [8, 14, 128], strides = [1, 1, 1]} : vector<8x16x128xf32> to vector<8x14x128xf32>
    %c0_3 = arith.constant 0 : index
    %c128 = arith.constant 128 : index
    %5 = vector.load %arg2[%c0_3, %c128] : memref<64x1536xbf16, #tpu.memory_space<vmem>>, vector<64x128xbf16>
    %cst_4 = arith.constant dense<0.000000e+00> : vector<128x128xf32>
    %6 = tpu.matmul %0, %5, %cst_4 {dimension_numbers = #tpu.dot_dimension_numbers<[1], [0], [0], [1], [0, 0, 1, 1], [], []>} : vector<128x64xbf16>, vector<64x128xbf16>, vector<128x128xf32> -> vector<128x128xf32>
    %7 = vector.shape_cast %6 : vector<128x128xf32> to vector<8x16x128xf32>
    %8 = vector.extract_strided_slice %7 {offsets = [0, 1, 0], sizes = [8, 14, 128], strides = [1, 1, 1]} : vector<8x16x128xf32> to vector<8x14x128xf32>
    %9 = arith.addf %4, %8 : vector<8x14x128xf32>
    %c0_5 = arith.constant 0 : index
    %c256 = arith.constant 256 : index
    %10 = vector.load %arg2[%c0_5, %c256] : memref<64x1536xbf16, #tpu.memory_space<vmem>>, vector<64x128xbf16>
    %cst_6 = arith.constant dense<0.000000e+00> : vector<128x128xf32>
    %11 = tpu.matmul %0, %10, %cst_6 {dimension_numbers = #tpu.dot_dimension_numbers<[1], [0], [0], [1], [0, 0, 1, 1], [], []>} : vector<128x64xbf16>, vector<64x128xbf16>, vector<128x128xf32> -> vector<128x128xf32>
    %12 = vector.shape_cast %11 : vector<128x128xf32> to vector<8x16x128xf32>
    %13 = vector.extract_strided_slice %12 {offsets = [0, 2, 0], sizes = [8, 14, 128], strides = [1, 1, 1]} : vector<8x16x128xf32> to vector<8x14x128xf32>
    %14 = arith.addf %9, %13 : vector<8x14x128xf32>
    %cst_7 = arith.constant dense<0xFF800000> : vector<8x128xf32>
    %15 = vector.multi_reduction <maximumf>, %14, %cst_7 [1] : vector<8x14x128xf32> to vector<8x128xf32>
    %c0_8 = arith.constant 0 : index
    %c384 = arith.constant 384 : index
    %16 = vector.load %arg2[%c0_8, %c384] : memref<64x1536xbf16, #tpu.memory_space<vmem>>, vector<64x128xbf16>
    %cst_9 = arith.constant dense<0.000000e+00> : vector<128x128xf32>
    %17 = tpu.matmul %0, %16, %cst_9 {dimension_numbers = #tpu.dot_dimension_numbers<[1], [0], [0], [1], [0, 0, 1, 1], [], []>} : vector<128x64xbf16>, vector<64x128xbf16>, vector<128x128xf32> -> vector<128x128xf32>
    %18 = vector.shape_cast %17 : vector<128x128xf32> to vector<8x16x128xf32>
    %19 = vector.extract_strided_slice %18 {offsets = [0, 0, 0], sizes = [8, 13, 128], strides = [1, 1, 1]} : vector<8x16x128xf32> to vector<8x13x128xf32>
    %c0_10 = arith.constant 0 : index
    %c512 = arith.constant 512 : index
    %20 = vector.load %arg2[%c0_10, %c512] : memref<64x1536xbf16, #tpu.memory_space<vmem>>, vector<64x128xbf16>
    %cst_11 = arith.constant dense<0.000000e+00> : vector<128x128xf32>
    %21 = tpu.matmul %0, %20, %cst_11 {dimension_numbers = #tpu.dot_dimension_numbers<[1], [0], [0], [1], [0, 0, 1, 1], [], []>} : vector<128x64xbf16>, vector<64x128xbf16>, vector<128x128xf32> -> vector<128x128xf32>
    %22 = vector.shape_cast %21 : vector<128x128xf32> to vector<8x16x128xf32>
    %23 = vector.extract_strided_slice %22 {offsets = [0, 1, 0], sizes = [8, 13, 128], strides = [1, 1, 1]} : vector<8x16x128xf32> to vector<8x13x128xf32>
    %24 = arith.addf %19, %23 : vector<8x13x128xf32>
    %c0_12 = arith.constant 0 : index
    %c640 = arith.constant 640 : index
    %25 = vector.load %arg2[%c0_12, %c640] : memref<64x1536xbf16, #tpu.memory_space<vmem>>, vector<64x128xbf16>
    %cst_13 = arith.constant dense<0.000000e+00> : vector<128x128xf32>
    %26 = tpu.matmul %0, %25, %cst_13 {dimension_numbers = #tpu.dot_dimension_numbers<[1], [0], [0], [1], [0, 0, 1, 1], [], []>} : vector<128x64xbf16>, vector<64x128xbf16>, vector<128x128xf32> -> vector<128x128xf32>
    %27 = vector.shape_cast %26 : vector<128x128xf32> to vector<8x16x128xf32>
    %28 = vector.extract_strided_slice %27 {offsets = [0, 2, 0], sizes = [8, 13, 128], strides = [1, 1, 1]} : vector<8x16x128xf32> to vector<8x13x128xf32>
    %29 = arith.addf %24, %28 : vector<8x13x128xf32>
    %c0_14 = arith.constant 0 : index
    %c768 = arith.constant 768 : index
    %30 = vector.load %arg2[%c0_14, %c768] : memref<64x1536xbf16, #tpu.memory_space<vmem>>, vector<64x128xbf16>
    %cst_15 = arith.constant dense<0.000000e+00> : vector<128x128xf32>
    %31 = tpu.matmul %0, %30, %cst_15 {dimension_numbers = #tpu.dot_dimension_numbers<[1], [0], [0], [1], [0, 0, 1, 1], [], []>} : vector<128x64xbf16>, vector<64x128xbf16>, vector<128x128xf32> -> vector<128x128xf32>
    %32 = vector.shape_cast %31 : vector<128x128xf32> to vector<8x16x128xf32>
    %33 = vector.extract_strided_slice %32 {offsets = [0, 3, 0], sizes = [8, 13, 128], strides = [1, 1, 1]} : vector<8x16x128xf32> to vector<8x13x128xf32>
    %34 = arith.addf %29, %33 : vector<8x13x128xf32>
    %cst_16 = arith.constant dense<0xFF800000> : vector<8x128xf32>
    %35 = vector.multi_reduction <maximumf>, %34, %cst_16 [1] : vector<8x13x128xf32> to vector<8x128xf32>
    %c0_17 = arith.constant 0 : index
    %c896 = arith.constant 896 : index
    %36 = vector.load %arg2[%c0_17, %c896] : memref<64x1536xbf16, #tpu.memory_space<vmem>>, vector<64x128xbf16>
    %cst_18 = arith.constant dense<0.000000e+00> : vector<128x128xf32>
    %37 = tpu.matmul %0, %36, %cst_18 {dimension_numbers = #tpu.dot_dimension_numbers<[1], [0], [0], [1], [0, 0, 1, 1], [], []>} : vector<128x64xbf16>, vector<64x128xbf16>, vector<128x128xf32> -> vector<128x128xf32>
    %38 = vector.shape_cast %37 : vector<128x128xf32> to vector<8x16x128xf32>
    %39 = vector.extract_strided_slice %38 {offsets = [0, 0, 0], sizes = [8, 12, 128], strides = [1, 1, 1]} : vector<8x16x128xf32> to vector<8x12x128xf32>
    %c0_19 = arith.constant 0 : index
    %c1024 = arith.constant 1024 : index
    %40 = vector.load %arg2[%c0_19, %c1024] : memref<64x1536xbf16, #tpu.memory_space<vmem>>, vector<64x128xbf16>
    %cst_20 = arith.constant dense<0.000000e+00> : vector<128x128xf32>
    %41 = tpu.matmul %0, %40, %cst_20 {dimension_numbers = #tpu.dot_dimension_numbers<[1], [0], [0], [1], [0, 0, 1, 1], [], []>} : vector<128x64xbf16>, vector<64x128xbf16>, vector<128x128xf32> -> vector<128x128xf32>
    %42 = vector.shape_cast %41 : vector<128x128xf32> to vector<8x16x128xf32>
    %43 = vector.extract_strided_slice %42 {offsets = [0, 1, 0], sizes = [8, 12, 128], strides = [1, 1, 1]} : vector<8x16x128xf32> to vector<8x12x128xf32>
    %44 = arith.addf %39, %43 : vector<8x12x128xf32>
    %c0_21 = arith.constant 0 : index
    %c1152 = arith.constant 1152 : index
    %45 = vector.load %arg2[%c0_21, %c1152] : memref<64x1536xbf16, #tpu.memory_space<vmem>>, vector<64x128xbf16>
    %cst_22 = arith.constant dense<0.000000e+00> : vector<128x128xf32>
    %46 = tpu.matmul %0, %45, %cst_22 {dimension_numbers = #tpu.dot_dimension_numbers<[1], [0], [0], [1], [0, 0, 1, 1], [], []>} : vector<128x64xbf16>, vector<64x128xbf16>, vector<128x128xf32> -> vector<128x128xf32>
    %47 = vector.shape_cast %46 : vector<128x128xf32> to vector<8x16x128xf32>
    %48 = vector.extract_strided_slice %47 {offsets = [0, 2, 0], sizes = [8, 12, 128], strides = [1, 1, 1]} : vector<8x16x128xf32> to vector<8x12x128xf32>
    %49 = arith.addf %44, %48 : vector<8x12x128xf32>
    %c0_23 = arith.constant 0 : index
    %c1280 = arith.constant 1280 : index
    %50 = vector.load %arg2[%c0_23, %c1280] : memref<64x1536xbf16, #tpu.memory_space<vmem>>, vector<64x128xbf16>
    %cst_24 = arith.constant dense<0.000000e+00> : vector<128x128xf32>
    %51 = tpu.matmul %0, %50, %cst_24 {dimension_numbers = #tpu.dot_dimension_numbers<[1], [0], [0], [1], [0, 0, 1, 1], [], []>} : vector<128x64xbf16>, vector<64x128xbf16>, vector<128x128xf32> -> vector<128x128xf32>
    %52 = vector.shape_cast %51 : vector<128x128xf32> to vector<8x16x128xf32>
    %53 = vector.extract_strided_slice %52 {offsets = [0, 3, 0], sizes = [8, 12, 128], strides = [1, 1, 1]} : vector<8x16x128xf32> to vector<8x12x128xf32>
    %54 = arith.addf %49, %53 : vector<8x12x128xf32>
    %c0_25 = arith.constant 0 : index
    %c1408 = arith.constant 1408 : index
    %55 = vector.load %arg2[%c0_25, %c1408] : memref<64x1536xbf16, #tpu.memory_space<vmem>>, vector<64x128xbf16>
    %cst_26 = arith.constant dense<0.000000e+00> : vector<128x128xf32>
    %56 = tpu.matmul %0, %55, %cst_26 {dimension_numbers = #tpu.dot_dimension_numbers<[1], [0], [0], [1], [0, 0, 1, 1], [], []>} : vector<128x64xbf16>, vector<64x128xbf16>, vector<128x128xf32> -> vector<128x128xf32>
    %57 = vector.shape_cast %56 : vector<128x128xf32> to vector<8x16x128xf32>
    %58 = vector.extract_strided_slice %57 {offsets = [0, 4, 0], sizes = [8, 12, 128], strides = [1, 1, 1]} : vector<8x16x128xf32> to vector<8x12x128xf32>
    %59 = arith.addf %54, %58 : vector<8x12x128xf32>
    %cst_27 = arith.constant dense<0xFF800000> : vector<8x128xf32>
    %60 = vector.multi_reduction <maximumf>, %59, %cst_27 [1] : vector<8x12x128xf32> to vector<8x128xf32>
    %61 = tpu.concatenate %15, %35, %60 in 1 : vector<8x128xf32>, vector<8x128xf32>, vector<8x128xf32> -> vector<8x384xf32>
    %c0_28 = arith.constant 0 : index
    %c0_29 = arith.constant 0 : index
    %62 = vector.load %arg3[%c0_28, %c0_29] : memref<1x384xf32, #tpu.memory_space<vmem>>, vector<1x384xf32>
    %63 = vector.broadcast %62 : vector<1x384xf32> to vector<8x384xf32>
    %64 = arith.addf %61, %63 : vector<8x384xf32>
    %65 = arith.truncf %64 : vector<8x384xf32> to vector<8x384xbf16>
    %c0_30 = arith.constant 0 : index
    %c0_31 = arith.constant 0 : index
    %66 = vector.load %arg4[%c0_30, %c0_31] : memref<384x128xbf16, #tpu.memory_space<vmem>>, vector<384x128xbf16>
    %cst_32 = arith.constant dense<0.000000e+00> : vector<8x128xf32>
    %67 = tpu.matmul %65, %66, %cst_32 {dimension_numbers = #tpu.dot_dimension_numbers<[1], [0], [0], [1], [0, 0, 1, 1], [], []>} : vector<8x384xbf16>, vector<384x128xbf16>, vector<8x128xf32> -> vector<8x128xf32>
    %c0_33 = arith.constant 0 : index
    %c0_34 = arith.constant 0 : index
    %68 = vector.load %arg5[%c0_33, %c0_34] : memref<1x128xf32, #tpu.memory_space<vmem>>, vector<1x128xf32>
    %69 = vector.broadcast %68 : vector<1x128xf32> to vector<8x128xf32>
    %70 = arith.addf %67, %69 : vector<8x128xf32>
    %c0_35 = arith.constant 0 : index
    %c0_36 = arith.constant 0 : index
    %71 = vector.load %arg6[%c0_35, %c0_36] : memref<8x128xf32, #tpu.memory_space<vmem>>, vector<8x128xf32>
    tpu.vector_store %arg6[%c0_35, %c0_36], %70 {strides = array<i32>} : memref<8x128xf32, #tpu.memory_space<vmem>>, vector<8x128xf32>,
    return
  }
  func.func @transform_0(%arg0: i32) -> (i32, i32) {
    %c0_i32 = arith.constant 0 : i32
    %c0_i32_0 = arith.constant 0 : i32
    return %arg0, %c0_i32 : i32, i32
  }
  func.func @transform_1(%arg0: i32) -> (i32, i32) {
    %c0_i32 = arith.constant 0 : i32
    %c0_i32_0 = arith.constant 0 : i32
    %c0_i32_1 = arith.constant 0 : i32
    return %c0_i32, %c0_i32_0 : i32, i32
  }
  func.func @transform_2(%arg0: i32) -> (i32, i32) {
    %c0_i32 = arith.constant 0 : i32
    %c0_i32_0 = arith.constant 0 : i32
    %c0_i32_1 = arith.constant 0 : i32
    return %c0_i32, %c0_i32_0 : i32, i32
  }
  func.func @transform_3(%arg0: i32) -> (i32, i32) {
    %c0_i32 = arith.constant 0 : i32
    %c0_i32_0 = arith.constant 0 : i32
    %c0_i32_1 = arith.constant 0 : i32
    return %c0_i32, %c0_i32_0 : i32, i32
  }
  func.func @transform_4(%arg0: i32) -> (i32, i32) {
    %c0_i32 = arith.constant 0 : i32
    %c0_i32_0 = arith.constant 0 : i32
    %c0_i32_1 = arith.constant 0 : i32
    return %c0_i32, %c0_i32_0 : i32, i32
  }
  func.func @transform_5(%arg0: i32) -> (i32, i32) {
    %c0_i32 = arith.constant 0 : i32
    %c0_i32_0 = arith.constant 0 : i32
    return %arg0, %c0_i32 : i32, i32
  }
}

</mosaic_0001>

<bundles_post_ra>
// kernel: tpu_custom_call.1
= control target key start
LH: loop header
LB: loop body
LE: loop exit
PB: predicated region body
PF: predicated region fallthrough
CT: control target
= control target key end

     0   :  { %10 = vsyncpa [#allocation3], 0  ;;  %s4410_s0 = inlined_call_operand.vmem [shape: bf16[128,64], index: 0, kind: input, shape index: {}]   ;;  %s4411_s1 = inlined_call_operand.hbm [shape: bf16[64,1536], index: 1, kind: input, shape index: {}]   ;;  %s4412_s2 = inlined_call_operand.vmem [shape: f32[1,384], index: 2, kind: input, shape index: {}]   ;;  %s4413_s3 = inlined_call_operand.hbm [shape: bf16[384,128], index: 3, kind: input, shape index: {}]   ;;  %s4414_s4 = inlined_call_operand.vmem [shape: f32[1,128], index: 4, kind: input, shape index: {}]   ;;  %s4415_s5 = inlined_call_operand.hbm [shape: f32[8,128], index: 5, kind: output, shape index: {}]  }
   0x1   :  { %11 = vsyncpa [#allocation6], 0 }
   0x2   :  { %12 = vsyncpa [#allocation4], 0  ;;  %s3718_s18 = smov [#allocation2]   ;;  %s3646_s22 = scalar_lea.hbm %s4411_s1, 6144 }
   0x3   :  { %s20_s19 = sshll.u32 %s3718_s18, 4  ;;  %p3647_p0 = scmp.ne.s32.totalorder %s4411_s1, %s3646_s22  ;;  %s21_s19 = int_to_ptr.vmem [resolvable:$true] %s20_s19 }
   0x4   :  { %p3650_p1 = scmp.lt.u32.totalorder %s3646_s22, %s4411_s1 }
   0x6   :  { %p3652_p2 = pnand %p3650_p1, %p3647_p0 }
   0x8   :  { %3655 = shalt.err (!%p3652_p2)
}
   0x9   :  { %s3656_s27 = scalar_lea.vmem %s21_s19, 6144  ;;  %p3661_p4 = scmp.lt.s32.totalorder %s21_s19, %s21_s19 }
   0xa   :  { %p3657_p3 = scmp.ne.s32.totalorder %s21_s19, %s3656_s27  ;;  %p3662_p5 = scmp.lt.s32.totalorder %s3656_s27, %s3656_s27 }
   0xc   :  { %p3663_p6 = por %p3662_p5, %p3661_p4 }
   0xe   :  { %p3664_p7 = pnand %p3663_p6, %p3657_p3 }
  0x10   :  { %3667 = shalt.err (!%p3664_p7)
}
  0x11   :  { %s3719_s28 = smov 768   ;;  %s3720_s29 = smov 48  }
  0x12   :  { %26 = dma.hbm_to_vmem [thread:$0]  %s4411_s1, 6144, %s21_s19, [#allocation3], %s3719_s28, %s3719_s28, %s3720_s29  }
  0x13   :  { %s3721_s7 = smov [#allocation5]   ;;  %s3668_s11 = scalar_lea.hbm %s4413_s3, 3072 }
  0x14   :  { %s34_s8 = sshll.u32 %s3721_s7, 4  ;;  %p3669_p8 = scmp.ne.s32.totalorder %s4413_s3, %s3668_s11  ;;  %s35_s8 = int_to_ptr.vmem [resolvable:$true] %s34_s8 }
  0x15   :  { %p3672_p9 = scmp.lt.u32.totalorder %s3668_s11, %s4413_s3 }
  0x17   :  { %p3674_p10 = pnand %p3672_p9, %p3669_p8 }
  0x19   :  { %3677 = shalt.err (!%p3674_p10)
}
  0x1a   :  { %s3678_s16 = scalar_lea.vmem %s35_s8, 3072  ;;  %p3683_p12 = scmp.lt.s32.totalorder %s35_s8, %s35_s8 }
  0x1b   :  { %p3679_p11 = scmp.ne.s32.totalorder %s35_s8, %s3678_s16  ;;  %p3684_p13 = scmp.lt.s32.totalorder %s3678_s16, %s3678_s16 }
  0x1d   :  { %p3685_p0 = por %p3684_p13, %p3683_p12 }
  0x1f   :  { %p3686_p1 = pnand %p3685_p0, %p3679_p11 }
  0x21   :  { %3689 = shalt.err (!%p3686_p1)
}
  0x22   :  { %s3722_s1 = smov 64   ;;  %s3723_s17 = smov 4  }
  0x23   :  { %40 = dma.hbm_to_vmem [thread:$0]  %s4413_s3, 3072, %s35_s8, [#allocation6], %s3722_s1, %s3722_s1, %s3723_s17  }
  0x24   :  { %3712 = dma.done.wait [#allocation3], 6144  }
  0x25   :  { %3713 = vsyncadd [#allocation3], 4294961152 }
  0x26   :  { %3714 = dma.done.wait [#allocation6], 3072  }
  0x27   :  { %3715 = vsyncadd [#allocation6], 4294964224  ;;  %v3566_v0 = vld [vmem:[#allocation2] ss:$48 sps:$4 sm:$0xff]   ;;  %v3567_v1 = vld [vmem:[#allocation2 + $0x4] ss:$48 sps:$4 sm:$0xff]  }
  0x28   :  { %3249 = vmatprep.subr.bf16.mxu0 %v3566_v0  ;;  %v3568_v2 = vld [vmem:[#allocation2 + $0x60] ss:$48 sps:$4 sm:$0xff]   ;;  %3273 = vmatprep.subr.bf16.mxu1 %v3567_v1  ;;  %v3569_v3 = vld [vmem:[#allocation2 + $0x64] ss:$48 sps:$4 sm:$0xff]   ;;  %vm138_vm0 = vcmask 523264   ;;  %v3793_v11 = vld [vmem:[%s4410_s0 + $0x8] sm:$0xff]  }
  0x29   :  { %3250 = vmatpush3.bf16.msra.mxu0 %v3566_v0  ;;  %3274 = vmatpush3.bf16.msra.mxu1 %v3567_v1  ;;  %v3570_v4 = vld [vmem:[#allocation2 + $0xc0] ss:$48 sps:$4 sm:$0xff]   ;;  %v3571_v5 = vld [vmem:[#allocation2 + $0xc4] ss:$48 sps:$4 sm:$0xff]   ;;  %v3576_v9 = vld [vmem:[#allocation2 + $0x8] ss:$48 sps:$4 sm:$0xff]  }
  0x2a   :  { %3251 = vmatprep.subr.bf16.mxu0 %v3568_v2  ;;  %3275 = vmatprep.subr.bf16.mxu1 %v3569_v3  ;;  %v3572_v6 = vld [vmem:[#allocation2 + $0x120] ss:$48 sps:$4 sm:$0xff]   ;;  %v3573_v8 = vld [vmem:[#allocation2 + $0x124] ss:$48 sps:$4 sm:$0xff]   ;;  %v3577_v10 = vld [vmem:[#allocation2 + $0xc] ss:$48 sps:$4 sm:$0xff]  }
  0x2b   :  { %v3784_v7 = vld [vmem:[%s4410_s0] sm:$0xff]   ;;  %v3798_v12 = vld [vmem:[%s4410_s0 + $0x10] sm:$0xff]   ;;  %v3580_v13 = vld [vmem:[#allocation2 + $0x68] ss:$48 sps:$4 sm:$0xff]   ;;  %vm405_vm1 = vcmask 1046528   ;;  %vm607_vm2 = vcmask 1045504  }
  0x2c   :  { %3257 = vmatprep.mubr.msk.bf16.mxu0 %vm138_vm0, %v3784_v7  ;;  %3281 = vmatprep.mubr.msk.bf16.mxu1 %vm138_vm0, %v3784_v7  ;;  %v3581_v14 = vld [vmem:[#allocation2 + $0x6c] ss:$48 sps:$4 sm:$0xff]   ;;  %v3584_v15 = vld [vmem:[#allocation2 + $0xc8] ss:$48 sps:$4 sm:$0xff]   ;;  %v3816_v18 = vld [vmem:[%s4410_s0 + $0x20] sm:$0xff]   ;;  %vm2531_vm3 = vcmask 1041409  }
  0x2d   :  { %3252 = vmatpush3.bf16.msra.mxu0 %v3568_v2  ;;  %3276 = vmatpush3.bf16.msra.mxu1 %v3569_v3  ;;  %v3585_v16 = vld [vmem:[#allocation2 + $0xcc] ss:$48 sps:$4 sm:$0xff]   ;;  %v3588_v19 = vld [vmem:[#allocation2 + $0x128] ss:$48 sps:$4 sm:$0xff]   ;;  %v3590_v22 = vld [vmem:[#allocation2 + $0x10] ss:$48 sps:$4 sm:$0xff]  }
  0x2e   :  { %3253 = vmatprep.subr.bf16.mxu0 %v3570_v4  ;;  %3277 = vmatprep.subr.bf16.mxu1 %v3571_v5  ;;  %v3811_v17 = vld [vmem:[%s4410_s0 + $0x18] sm:$0xff]   ;;  %v3829_v21 = vld [vmem:[%s4410_s0 + $0x28] sm:$0xff]   ;;  %v3591_v23 = vld [vmem:[#allocation2 + $0x14] ss:$48 sps:$4 sm:$0xff]   ;;  %vm2533_vm4 = vcmask 1042434   ;;  %vm2535_vm5 = vcmask 1043459  }
  0x2f   :  { %v3589_v20 = vld [vmem:[#allocation2 + $0x12c] ss:$48 sps:$4 sm:$0xff]   ;;  %v3834_v24 = vld [vmem:[%s4410_s0 + $0x30] sm:$0xff]   ;;  %v3598_v32 = vld [vmem:[#allocation2 + $0x18] ss:$48 sps:$4 sm:$0xff]   ;;  %vm2537_vm6 = vcmask 1044484  }
  0x30   :  { %v3847_v25 = vld [vmem:[%s4410_s0 + $0x38] sm:$0xff]   ;;  %v3592_v26 = vld [vmem:[#allocation2 + $0x70] ss:$48 sps:$4 sm:$0xff]   ;;  %v3593_v27 = vld [vmem:[#allocation2 + $0x74] ss:$48 sps:$4 sm:$0xff]   ;;  %vm2539_vm7 = vcmask 1045509  }
  0x31   :  { %3254 = vmatpush3.bf16.msra.mxu0 %v3570_v4  ;;  %3278 = vmatpush3.bf16.msra.mxu1 %v3571_v5  ;;  %v3594_v28 = vld [vmem:[#allocation2 + $0xd0] ss:$48 sps:$4 sm:$0xff]   ;;  %v3595_v29 = vld [vmem:[#allocation2 + $0xd4] ss:$48 sps:$4 sm:$0xff]   ;;  %v3599_v33 = vld [vmem:[#allocation2 + $0x1c] ss:$48 sps:$4 sm:$0xff]  }
  0x32   :  { %3255 = vmatprep.subr.bf16.mxu0 %v3572_v6  ;;  %3279 = vmatprep.subr.bf16.mxu1 %v3573_v8  ;;  %v3596_v30 = vld [vmem:[#allocation2 + $0x130] ss:$48 sps:$4 sm:$0xff]   ;;  %v3597_v31 = vld [vmem:[#allocation2 + $0x134] ss:$48 sps:$4 sm:$0xff]   ;;  %v3600_v34 = vld [vmem:[#allocation2 + $0x78] ss:$48 sps:$4 sm:$0xff]  }
  0x33   :  { %v3601_v35 = vld [vmem:[#allocation2 + $0x7c] ss:$48 sps:$4 sm:$0xff]   ;;  %v3602_v36 = vld [vmem:[#allocation2 + $0xd8] ss:$48 sps:$4 sm:$0xff]   ;;  %v3606_v40 = vld [vmem:[#allocation2 + $0x20] ss:$48 sps:$4 sm:$0xff]  }
  0x34   :  { %v3603_v37 = vld [vmem:[#allocation2 + $0xdc] ss:$48 sps:$4 sm:$0xff]   ;;  %v3604_v38 = vld [vmem:[#allocation2 + $0x138] ss:$48 sps:$4 sm:$0xff]   ;;  %v3607_v41 = vld [vmem:[#allocation2 + $0x24] ss:$48 sps:$4 sm:$0xff]  }
  0x35   :  { %3256 = vmatpush3.bf16.msra.mxu0 %v3572_v6  ;;  %3280 = vmatpush3.bf16.msra.mxu1 %v3573_v8  ;;  %v3605_v39 = vld [vmem:[#allocation2 + $0x13c] ss:$48 sps:$4 sm:$0xff]   ;;  %v3608_v42 = vld [vmem:[#allocation2 + $0x80] ss:$48 sps:$4 sm:$0xff]   ;;  %v3609_v43 = vld [vmem:[#allocation2 + $0x84] ss:$48 sps:$4 sm:$0xff]  }
  0x36   :  { %3297 = vmatprep.subr.bf16.mxu0 %v3576_v9  ;;  %3321 = vmatprep.subr.bf16.mxu1 %v3577_v10  ;;  %v3610_v44 = vld [vmem:[#allocation2 + $0xe0] ss:$48 sps:$4 sm:$0xff]   ;;  %v3611_v45 = vld [vmem:[#allocation2 + $0xe4] ss:$48 sps:$4 sm:$0xff]   ;;  %v3614_v48 = vld [vmem:[#allocation2 + $0x28] ss:$48 sps:$4 sm:$0xff]  }
  0x37   :  { %v3612_v46 = vld [vmem:[#allocation2 + $0x140] ss:$48 sps:$4 sm:$0xff]   ;;  %v3613_v47 = vld [vmem:[#allocation2 + $0x144] ss:$48 sps:$4 sm:$0xff]   ;;  %v3615_v49 = vld [vmem:[#allocation2 + $0x2c] ss:$48 sps:$4 sm:$0xff]  }
  0x38   :  { %3258 = vmatmul.mubr.msk.bf16.vlgmr.msra.gmra.mrb[0].mxu0 %vm138_vm0, %v3793_v11  ;;  %3282 = vmatmul.mubr.msk.bf16.vlgmr.msra.gmra.mrb[0].mxu1 %vm138_vm0, %v3793_v11  ;;  %v3616_v50 = vld [vmem:[#allocation2 + $0x88] ss:$48 sps:$4 sm:$0xff]   ;;  %v3617_v51 = vld [vmem:[#allocation2 + $0x8c] ss:$48 sps:$4 sm:$0xff]   ;;  %v3622_v56 = vld [vmem:[#allocation5 + $0x40] sm:$0xff]   ;;  %vm2541_vm8 = vcmask 1046534  }
  0x39   :  { %3298 = vmatpush3.bf16.msra.mxu0 %v3576_v9  ;;  %3322 = vmatpush3.bf16.msra.mxu1 %v3577_v10  ;;  %v3618_v52 = vld [vmem:[#allocation2 + $0xe8] ss:$48 sps:$4 sm:$0xff]   ;;  %v3619_v53 = vld [vmem:[#allocation2 + $0xec] ss:$48 sps:$4 sm:$0xff]   ;;  %v3623_v57 = vld [vmem:[#allocation5] sm:$0xff]   ;;  %vm2543_vm9 = vcmask 1047559  }
  0x3a   :  { %3261 = vmatprep.mubr.msk.bf16.mxu0 %vm138_vm0, %v3798_v12  ;;  %3285 = vmatprep.mubr.msk.bf16.mxu1 %vm138_vm0, %v3798_v12  ;;  %v3620_v54 = vld [vmem:[#allocation2 + $0x148] ss:$48 sps:$4 sm:$0xff]   ;;  %v3621_v55 = vld [vmem:[#allocation2 + $0x14c] ss:$48 sps:$4 sm:$0xff]   ;;  %v3626_v61 = vld [vmem:[#allocation5 + $0x50] sm:$0xff]   ;;  %vm3725_vm10 = vmmov 0  }
  0x3b   :  { %3299 = vmatprep.subr.bf16.mxu0 %v3580_v13  ;;  %3323 = vmatprep.subr.bf16.mxu1 %v3581_v14  ;;  %v3624_v58 = vld [vmem:[#allocation5 + $0x48] sm:$0xff]   ;;  %v3627_v0 = vld [vmem:[#allocation5 + $0x10] sm:$0xff]   ;;  %v3628_v9 = vld [vmem:[#allocation5 + $0x58] sm:$0xff]   ;;  %vm1404_vm11 = vcmask 1044480   ;;  %vm2402_vm12 = vcmask 1043456   ;;  %s3726_s12 = smov [#allocation7]  }
  0x3c   :  { %v3625_v59 = vld [vmem:[#allocation5 + $0x8] sm:$0xff]   ;;  %s2887_s13 = sshll.u32 %s3726_s12, 4  ;;  %s2888_s13 = int_to_ptr.vmem [resolvable:$true] %s2887_s13 }
  0x3d   :  { %3300 = vmatpush3.bf16.msra.mxu0 %v3580_v13  ;;  %3324 = vmatpush3.bf16.msra.mxu1 %v3581_v14  ;;  %s3690_s14 = scalar_lea.vmem %s2888_s13, 128  ;;  %p3695_p3 = scmp.lt.s32.totalorder %s2888_s13, %s2888_s13 }
  0x3e   :  { %3301 = vmatprep.subr.bf16.mxu0 %v3584_v15  ;;  %3325 = vmatprep.subr.bf16.mxu1 %v3585_v16  ;;  %p3691_p2 = scmp.ne.s32.totalorder %s2888_s13, %s3690_s14  ;;  %p3696_p4 = scmp.lt.s32.totalorder %s3690_s14, %s3690_s14 }
  0x40   :  { %3262 = vmatmul.mubr.msk.bf16.gmra.mrb[4].mxu0 %vm138_vm0, %v3811_v17  ;;  %3286 = vmatmul.mubr.msk.bf16.gmra.mrb[4].mxu1 %vm138_vm0, %v3811_v17  ;;  %p3697_p5 = por %p3696_p4, %p3695_p3 }
  0x41   :  { %3265 = vmatprep.mubr.msk.bf16.mxu0 %vm138_vm0, %v3816_v18  ;;  %3289 = vmatprep.mubr.msk.bf16.mxu1 %vm138_vm0, %v3816_v18 }
  0x42   :  { %3302 = vmatpush3.bf16.msra.mxu0 %v3584_v15  ;;  %3326 = vmatpush3.bf16.msra.mxu1 %v3585_v16  ;;  %p3698_p6 = pnand %p3697_p5, %p3691_p2 }
  0x43   :  { %3303 = vmatprep.subr.bf16.mxu0 %v3588_v19  ;;  %3327 = vmatprep.subr.bf16.mxu1 %v3589_v20 }
  0x46   :  { %3304 = vmatpush3.bf16.msra.mxu0 %v3588_v19  ;;  %3328 = vmatpush3.bf16.msra.mxu1 %v3589_v20  ;;  %v3630_v19 = vld [vmem:[#allocation5 + $0x60] sm:$0xff]  }
  0x47   :  { %3345 = vmatprep.subr.bf16.mxu0 %v3590_v22  ;;  %3369 = vmatprep.subr.bf16.mxu1 %v3591_v23 }
  0x48   :  { %3266 = vmatmul.mubr.msk.bf16.gmra.mrb[8].mxu0 %vm138_vm0, %v3829_v21  ;;  %3290 = vmatmul.mubr.msk.bf16.gmra.mrb[8].mxu1 %vm138_vm0, %v3829_v21 }
  0x49   :  { %3269 = vmatprep.mubr.msk.bf16.mxu0 %vm138_vm0, %v3834_v24  ;;  %3293 = vmatprep.mubr.msk.bf16.mxu1 %vm138_vm0, %v3834_v24 }
  0x50   :  { %3270 = vmatmul.mubr.msk.bf16.gmra.mrb[12].mxu0 %vm138_vm0, %v3847_v25  ;;  %3294 = vmatmul.mubr.msk.bf16.gmra.mrb[12].mxu1 %vm138_vm0, %v3847_v25 }
  0x51   :  { %3305 = vmatprep.mubr.msk.bf16.mxu0 %vm138_vm0, %v3784_v7  ;;  %3329 = vmatprep.mubr.msk.bf16.mxu1 %vm138_vm0, %v3784_v7 }
  0x58   :  { %3306 = vmatmul.mubr.msk.bf16.vlgmr.msra.gmra.mrb[16].mxu0 %vm138_vm0, %v3793_v11  ;;  %3330 = vmatmul.mubr.msk.bf16.vlgmr.msra.gmra.mrb[16].mxu1 %vm138_vm0, %v3793_v11 }
  0x59   :  { %3346 = vmatpush3.bf16.msra.mxu0 %v3590_v22  ;;  %3370 = vmatpush3.bf16.msra.mxu1 %v3591_v23  ;;  %v3631_v22 = vld [vmem:[#allocation5 + $0x20] sm:$0xff]  }
  0x5a   :  { %3309 = vmatprep.mubr.msk.bf16.mxu0 %vm138_vm0, %v3798_v12  ;;  %3333 = vmatprep.mubr.msk.bf16.mxu1 %vm138_vm0, %v3798_v12 }
  0x5b   :  { %3347 = vmatprep.subr.bf16.mxu0 %v3592_v26  ;;  %3371 = vmatprep.subr.bf16.mxu1 %v3593_v27 }
  0x5d   :  { %3348 = vmatpush3.bf16.msra.mxu0 %v3592_v26  ;;  %3372 = vmatpush3.bf16.msra.mxu1 %v3593_v27 }
  0x5e   :  { %3349 = vmatprep.subr.bf16.mxu0 %v3594_v28  ;;  %3373 = vmatprep.subr.bf16.mxu1 %v3595_v29 }
  0x60   :  { %3310 = vmatmul.mubr.msk.bf16.gmra.mrb[20].mxu0 %vm138_vm0, %v3811_v17  ;;  %3334 = vmatmul.mubr.msk.bf16.gmra.mrb[20].mxu1 %vm138_vm0, %v3811_v17 }
  0x61   :  { %3313 = vmatprep.mubr.msk.bf16.mxu0 %vm138_vm0, %v3816_v18  ;;  %3337 = vmatprep.mubr.msk.bf16.mxu1 %vm138_vm0, %v3816_v18 }
  0x62   :  { %3350 = vmatpush3.bf16.msra.mxu0 %v3594_v28  ;;  %3374 = vmatpush3.bf16.msra.mxu1 %v3595_v29 }
  0x63   :  { %3351 = vmatprep.subr.bf16.mxu0 %v3596_v30  ;;  %3375 = vmatprep.subr.bf16.mxu1 %v3597_v31 }
  0x66   :  { %3352 = vmatpush3.bf16.msra.mxu0 %v3596_v30  ;;  %3376 = vmatpush3.bf16.msra.mxu1 %v3597_v31  ;;  %v3632_v31 = vld [vmem:[#allocation5 + $0x68] sm:$0xff]  }
  0x67   :  { %3393 = vmatprep.subr.bf16.mxu0 %v3598_v32  ;;  %3417 = vmatprep.subr.bf16.mxu1 %v3599_v33 }
  0x68   :  { %3314 = vmatmul.mubr.msk.bf16.gmra.mrb[24].mxu0 %vm138_vm0, %v3829_v21  ;;  %3338 = vmatmul.mubr.msk.bf16.gmra.mrb[24].mxu1 %vm138_vm0, %v3829_v21 }
  0x69   :  { %3317 = vmatprep.mubr.msk.bf16.mxu0 %vm138_vm0, %v3834_v24  ;;  %3341 = vmatprep.mubr.msk.bf16.mxu1 %vm138_vm0, %v3834_v24 }
  0x70   :  { %3318 = vmatmul.mubr.msk.bf16.gmra.mrb[28].mxu0 %vm138_vm0, %v3847_v25  ;;  %3342 = vmatmul.mubr.msk.bf16.gmra.mrb[28].mxu1 %vm138_vm0, %v3847_v25 }
  0x71   :  { %3353 = vmatprep.mubr.msk.bf16.mxu0 %vm138_vm0, %v3784_v7  ;;  %3377 = vmatprep.mubr.msk.bf16.mxu1 %vm138_vm0, %v3784_v7 }
  0x78   :  { %3354 = vmatmul.mubr.msk.bf16.vlgmr.msra.gmra.mrb[32].mxu0 %vm138_vm0, %v3793_v11  ;;  %3378 = vmatmul.mubr.msk.bf16.vlgmr.msra.gmra.mrb[32].mxu1 %vm138_vm0, %v3793_v11 }
  0x79   :  { %3394 = vmatpush3.bf16.msra.mxu0 %v3598_v32  ;;  %3418 = vmatpush3.bf16.msra.mxu1 %v3599_v33  ;;  %v3633_v33 = vld [vmem:[#allocation5 + $0x28] sm:$0xff]  }
  0x7a   :  { %3357 = vmatprep.mubr.msk.bf16.mxu0 %vm138_vm0, %v3798_v12  ;;  %3381 = vmatprep.mubr.msk.bf16.mxu1 %vm138_vm0, %v3798_v12 }
  0x7b   :  { %3395 = vmatprep.subr.bf16.mxu0 %v3600_v34  ;;  %3419 = vmatprep.subr.bf16.mxu1 %v3601_v35 }
  0x7d   :  { %3396 = vmatpush3.bf16.msra.mxu0 %v3600_v34  ;;  %3420 = vmatpush3.bf16.msra.mxu1 %v3601_v35 }
  0x7e   :  { %3397 = vmatprep.subr.bf16.mxu0 %v3602_v36  ;;  %3421 = vmatprep.subr.bf16.mxu1 %v3603_v37 }
  0x80   :  { %3358 = vmatmul.mubr.msk.bf16.gmra.mrb[36].mxu0 %vm138_vm0, %v3811_v17  ;;  %3382 = vmatmul.mubr.msk.bf16.gmra.mrb[36].mxu1 %vm138_vm0, %v3811_v17 }
  0x81   :  { %3361 = vmatprep.mubr.msk.bf16.mxu0 %vm138_vm0, %v3816_v18  ;;  %3385 = vmatprep.mubr.msk.bf16.mxu1 %vm138_vm0, %v3816_v18 }
  0x82   :  { %3398 = vmatpush3.bf16.msra.mxu0 %v3602_v36  ;;  %3422 = vmatpush3.bf16.msra.mxu1 %v3603_v37 }
  0x83   :  { %3399 = vmatprep.subr.bf16.mxu0 %v3604_v38  ;;  %3423 = vmatprep.subr.bf16.mxu1 %v3605_v39 }
  0x86   :  { %3400 = vmatpush3.bf16.msra.mxu0 %v3604_v38  ;;  %3424 = vmatpush3.bf16.msra.mxu1 %v3605_v39 }
  0x87   :  { %3441 = vmatprep.subr.bf16.mxu0 %v3606_v40  ;;  %3465 = vmatprep.subr.bf16.mxu1 %v3607_v41 }
  0x88   :  { %3362 = vmatmul.mubr.msk.bf16.gmra.mrb[40].mxu0 %vm138_vm0, %v3829_v21  ;;  %3386 = vmatmul.mubr.msk.bf16.gmra.mrb[40].mxu1 %vm138_vm0, %v3829_v21 }
  0x89   :  { %3365 = vmatprep.mubr.msk.bf16.mxu0 %vm138_vm0, %v3834_v24  ;;  %3389 = vmatprep.mubr.msk.bf16.mxu1 %vm138_vm0, %v3834_v24 }
  0x90   :  { %3366 = vmatmul.mubr.msk.bf16.gmra.mrb[44].mxu0 %vm138_vm0, %v3847_v25  ;;  %3390 = vmatmul.mubr.msk.bf16.gmra.mrb[44].mxu1 %vm138_vm0, %v3847_v25 }
  0x91   :  { %3401 = vmatprep.mubr.msk.bf16.mxu0 %vm138_vm0, %v3784_v7  ;;  %3425 = vmatprep.mubr.msk.bf16.mxu1 %vm138_vm0, %v3784_v7 }
  0x98   :  { %3402 = vmatmul.mubr.msk.bf16.vlgmr.msra.gmra.mrb[48].mxu0 %vm138_vm0, %v3793_v11  ;;  %3426 = vmatmul.mubr.msk.bf16.vlgmr.msra.gmra.mrb[48].mxu1 %vm138_vm0, %v3793_v11 }
  0x99   :  { %3442 = vmatpush3.bf16.msra.mxu0 %v3606_v40  ;;  %3466 = vmatpush3.bf16.msra.mxu1 %v3607_v41  ;;  %v3634_v41 = vld [vmem:[#allocation5 + $0x70] sm:$0xff]  }
  0x9a   :  { %3405 = vmatprep.mubr.msk.bf16.mxu0 %vm138_vm0, %v3798_v12  ;;  %3429 = vmatprep.mubr.msk.bf16.mxu1 %vm138_vm0, %v3798_v12 }
  0x9b   :  { %3443 = vmatprep.subr.bf16.mxu0 %v3608_v42  ;;  %3467 = vmatprep.subr.bf16.mxu1 %v3609_v43 }
  0x9d   :  { %3444 = vmatpush3.bf16.msra.mxu0 %v3608_v42  ;;  %3468 = vmatpush3.bf16.msra.mxu1 %v3609_v43 }
  0x9e   :  { %3445 = vmatprep.subr.bf16.mxu0 %v3610_v44  ;;  %3469 = vmatprep.subr.bf16.mxu1 %v3611_v45 }
  0xa0   :  { %3406 = vmatmul.mubr.msk.bf16.gmra.mrb[52].mxu0 %vm138_vm0, %v3811_v17  ;;  %3430 = vmatmul.mubr.msk.bf16.gmra.mrb[52].mxu1 %vm138_vm0, %v3811_v17 }
  0xa1   :  { %3409 = vmatprep.mubr.msk.bf16.mxu0 %vm138_vm0, %v3816_v18  ;;  %3433 = vmatprep.mubr.msk.bf16.mxu1 %vm138_vm0, %v3816_v18 }
  0xa2   :  { %3446 = vmatpush3.bf16.msra.mxu0 %v3610_v44  ;;  %3470 = vmatpush3.bf16.msra.mxu1 %v3611_v45  ;;  %v3635_v44 = vld [vmem:[#allocation5 + $0x30] sm:$0xff]  }
  0xa3   :  { %3447 = vmatprep.subr.bf16.mxu0 %v3612_v46  ;;  %3471 = vmatprep.subr.bf16.mxu1 %v3613_v47 }
  0xa6   :  { %3448 = vmatpush3.bf16.msra.mxu0 %v3612_v46  ;;  %3472 = vmatpush3.bf16.msra.mxu1 %v3613_v47 }
  0xa7   :  { %3489 = vmatprep.subr.bf16.mxu0 %v3614_v48  ;;  %3513 = vmatprep.subr.bf16.mxu1 %v3615_v49 }
  0xa8   :  { %3410 = vmatmul.mubr.msk.bf16.gmra.mrb[56].mxu0 %vm138_vm0, %v3829_v21  ;;  %3434 = vmatmul.mubr.msk.bf16.gmra.mrb[56].mxu1 %vm138_vm0, %v3829_v21 }
  0xa9   :  { %3413 = vmatprep.mubr.msk.bf16.mxu0 %vm138_vm0, %v3834_v24  ;;  %3437 = vmatprep.mubr.msk.bf16.mxu1 %vm138_vm0, %v3834_v24 }
  0xb0   :  { %3414 = vmatmul.mubr.msk.bf16.gmra.mrb[60].mxu0 %vm138_vm0, %v3847_v25  ;;  %3438 = vmatmul.mubr.msk.bf16.gmra.mrb[60].mxu1 %vm138_vm0, %v3847_v25 }
  0xb1   :  { %3449 = vmatprep.mubr.msk.bf16.mxu0 %vm138_vm0, %v3784_v7  ;;  %3473 = vmatprep.mubr.msk.bf16.mxu1 %vm138_vm0, %v3784_v7 }
  0xb8   :  { %3450 = vmatmul.mubr.msk.bf16.vlgmr.msra.gmra.mrb[64].mxu0 %vm138_vm0, %v3793_v11  ;;  %3474 = vmatmul.mubr.msk.bf16.vlgmr.msra.gmra.mrb[64].mxu1 %vm138_vm0, %v3793_v11 }
  0xb9   :  { %3490 = vmatpush3.bf16.msra.mxu0 %v3614_v48  ;;  %3514 = vmatpush3.bf16.msra.mxu1 %v3615_v49 }
  0xba   :  { %3453 = vmatprep.mubr.msk.bf16.mxu0 %vm138_vm0, %v3798_v12  ;;  %3477 = vmatprep.mubr.msk.bf16.mxu1 %vm138_vm0, %v3798_v12 }
  0xbb   :  { %3491 = vmatprep.subr.bf16.mxu0 %v3616_v50  ;;  %3515 = vmatprep.subr.bf16.mxu1 %v3617_v51 }
  0xbd   :  { %3492 = vmatpush3.bf16.msra.mxu0 %v3616_v50  ;;  %3516 = vmatpush3.bf16.msra.mxu1 %v3617_v51 }
  0xbe   :  { %3493 = vmatprep.subr.bf16.mxu0 %v3618_v52  ;;  %3517 = vmatprep.subr.bf16.mxu1 %v3619_v53 }
  0xc0   :  { %3454 = vmatmul.mubr.msk.bf16.gmra.mrb[68].mxu0 %vm138_vm0, %v3811_v17  ;;  %3478 = vmatmul.mubr.msk.bf16.gmra.mrb[68].mxu1 %vm138_vm0, %v3811_v17 }
  0xc1   :  { %3457 = vmatprep.mubr.msk.bf16.mxu0 %vm138_vm0, %v3816_v18  ;;  %3481 = vmatprep.mubr.msk.bf16.mxu1 %vm138_vm0, %v3816_v18 }
  0xc2   :  { %3494 = vmatpush3.bf16.msra.mxu0 %v3618_v52  ;;  %3518 = vmatpush3.bf16.msra.mxu1 %v3619_v53  ;;  %v3636_v53 = vld [vmem:[#allocation5 + $0x78] sm:$0xff]  }
  0xc3   :  { %3495 = vmatprep.subr.bf16.mxu0 %v3620_v54  ;;  %3519 = vmatprep.subr.bf16.mxu1 %v3621_v55 }
  0xc6   :  { %3496 = vmatpush3.bf16.msra.mxu0 %v3620_v54  ;;  %3520 = vmatpush3.bf16.msra.mxu1 %v3621_v55  ;;  %v3637_v55 = vld [vmem:[#allocation5 + $0x38] sm:$0xff]  }
  0xc7   :  { %3218 = vmatprep.subr.bf16.mxu0 %v3622_v56 }
  0xc8   :  { %3458 = vmatmul.mubr.msk.bf16.gmra.mrb[72].mxu0 %vm138_vm0, %v3829_v21  ;;  %3482 = vmatmul.mubr.msk.bf16.gmra.mrb[72].mxu1 %vm138_vm0, %v3829_v21 }
  0xc9   :  { %3461 = vmatprep.mubr.msk.bf16.mxu0 %vm138_vm0, %v3834_v24  ;;  %3485 = vmatprep.mubr.msk.bf16.mxu1 %vm138_vm0, %v3834_v24 }
  0xd0   :  { %3462 = vmatmul.mubr.msk.bf16.gmra.mrb[76].mxu0 %vm138_vm0, %v3847_v25  ;;  %3486 = vmatmul.mubr.msk.bf16.gmra.mrb[76].mxu1 %vm138_vm0, %v3847_v25 }
  0xd1   :  { %3497 = vmatprep.mubr.msk.bf16.mxu0 %vm138_vm0, %v3784_v7  ;;  %3521 = vmatprep.mubr.msk.bf16.mxu1 %vm138_vm0, %v3784_v7 }
  0xd8   :  { %3498 = vmatmul.mubr.msk.bf16.vlgmr.msra.gmra.mrb[80].mxu0 %vm138_vm0, %v3793_v11  ;;  %3522 = vmatmul.mubr.msk.bf16.vlgmr.msra.gmra.mrb[80].mxu1 %vm138_vm0, %v3793_v11  ;;  %v3629_v11 = vld [vmem:[#allocation5 + $0x18] sm:$0xff]  }
  0xd9   :  { %3501 = vmatprep.mubr.msk.bf16.mxu0 %vm138_vm0, %v3798_v12  ;;  %3525 = vmatprep.mubr.msk.bf16.mxu1 %vm138_vm0, %v3798_v12 }
  0xda   :  { %3219 = vmatpush3.bf16.msra.mxu0 %v3623_v57 }
  0xdb   :  { %3220 = vmatprep.subr.bf16.mxu0 %v3624_v58 }
  0xde   :  { %3221 = vmatpush3.bf16.msra.mxu0 %v3625_v59 }
  0xdf   :  { %3222 = vmatprep.subr.bf16.mxu0 %v3626_v61 }
  0xe0   :  { %3502 = vmatmul.mubr.msk.bf16.gmra.mrb[84].mxu0 %vm138_vm0, %v3811_v17  ;;  %3526 = vmatmul.mubr.msk.bf16.gmra.mrb[84].mxu1 %vm138_vm0, %v3811_v17 }
  0xe1   :  { %3505 = vmatprep.mubr.msk.bf16.mxu0 %vm138_vm0, %v3816_v18  ;;  %3529 = vmatprep.mubr.msk.bf16.mxu1 %vm138_vm0, %v3816_v18 }
  0xe2   :  { %3223 = vmatpush3.bf16.msra.mxu0 %v3627_v0 }
  0xe3   :  { %3224 = vmatprep.subr.bf16.mxu0 %v3628_v9 }
  0xe6   :  { %3225 = vmatpush3.bf16.msra.mxu0 %v3629_v11 }
  0xe7   :  { %3226 = vmatprep.subr.bf16.mxu0 %v3630_v19 }
  0xe8   :  { %3506 = vmatmul.mubr.msk.bf16.gmra.mrb[88].mxu0 %vm138_vm0, %v3829_v21  ;;  %3530 = vmatmul.mubr.msk.bf16.gmra.mrb[88].mxu1 %vm138_vm0, %v3829_v21 }
  0xe9   :  { %3509 = vmatprep.mubr.msk.bf16.mxu0 %vm138_vm0, %v3834_v24  ;;  %3533 = vmatprep.mubr.msk.bf16.mxu1 %vm138_vm0, %v3834_v24 }
  0xea   :  { %3227 = vmatpush3.bf16.msra.mxu0 %v3631_v22 }
  0xeb   :  { %3228 = vmatprep.subr.bf16.mxu0 %v3632_v31 }
  0xee   :  { %3229 = vmatpush3.bf16.msra.mxu0 %v3633_v33 }
  0xef   :  { %3230 = vmatprep.subr.bf16.mxu0 %v3634_v41 }
  0xf0   :  { %3510 = vmatmul.mubr.msk.bf16.gmra.mrb[92].mxu0 %vm138_vm0, %v3847_v25  ;;  %3534 = vmatmul.mubr.msk.bf16.gmra.mrb[92].mxu1 %vm138_vm0, %v3847_v25 }
  0xf2   :  { %3231 = vmatpush3.bf16.msra.mxu0 %v3635_v44 }
  0xf3   :  { %3232 = vmatprep.subr.bf16.mxu0 %v3636_v53 }
  0xf6   :  { %3233 = vmatpush3.bf16.msra.mxu0 %v3637_v55 }
 0x10b   :  { %v3259_v60 = vpop.f32.mrb[0].mxu0  ;;  %v3283_v62 = vpop.f32.mrb[0].mxu1 }
 0x10c   :  { %v197_v63 = vpop.f32.mrb[1].mxu0  ;;  %v409_v1 = vrot.slane %v3283_v62, 1  ;;  %v326_v2 = vpop.f32.mrb[1].mxu1 }
 0x10d   :  { %v3260_v3 = vpop.f32.mrb[2].mxu0  ;;  %v406_v4 = vrot.slane %v326_v2, 1  ;;  %v3284_v5 = vpop.f32.mrb[2].mxu1 }
 0x10e   :  { %v200_v6 = vpop.f32.mrb[3].mxu0  ;;  %v410_v7 = vrot.slane %v3284_v5, 1  ;;  %v329_v8 = vpop.f32.mrb[3].mxu1 }
 0x10f   :  { %v407_v10 = vrot.slane %v329_v8, 1 }
 0x110   :  { %v411_v12 = vsel %vm405_vm1, %v409_v1, %v410_v7  ;;  %v4014_v13 = vadd.f32 %v3260_v3, %v410_v7 }
 0x111   :  { %v4016_v14 = vadd.f32 %v3259_v60, %v411_v12  ;;  %v408_v15 = vsel %vm405_vm1, %v406_v4, %v407_v10  ;;  %v4019_v16 = vadd.f32 %v407_v10, %v200_v6 }
 0x112   :  { %v4021_v17 = vadd.f32 %v408_v15, %v197_v63 }
 0x113   :  { %v3263_v18 = vpop.f32.mrb[4].mxu0  ;;  %v3287_v20 = vpop.f32.mrb[4].mxu1 }
 0x114   :  { %v213_v21 = vpop.f32.mrb[5].mxu0  ;;  %v415_v23 = vrot.slane %v3287_v20, 1  ;;  %v342_v24 = vpop.f32.mrb[5].mxu1 }
 0x115   :  { %v3264_v25 = vpop.f32.mrb[6].mxu0  ;;  %v412_v26 = vrot.slane %v342_v24, 1  ;;  %v3288_v27 = vpop.f32.mrb[6].mxu1 }
 0x116   :  { %v216_v28 = vpop.f32.mrb[7].mxu0  ;;  %v416_v29 = vrot.slane %v3288_v27, 1  ;;  %v345_v30 = vpop.f32.mrb[7].mxu1 }
 0x117   :  { %v413_v32 = vrot.slane %v345_v30, 1 }
 0x118   :  { %v417_v34 = vsel %vm405_vm1, %v415_v23, %v416_v29  ;;  %v4024_v35 = vadd.f32 %v3264_v25, %v416_v29 }
 0x119   :  { %v4026_v36 = vadd.f32 %v3263_v18, %v417_v34  ;;  %v414_v37 = vsel %vm405_vm1, %v412_v26, %v413_v32  ;;  %v4029_v38 = vadd.f32 %v413_v32, %v216_v28 }
 0x11a   :  { %v4031_v39 = vadd.f32 %v414_v37, %v213_v21 }
 0x11b   :  { %v3267_v40 = vpop.f32.mrb[8].mxu0  ;;  %v3291_v42 = vpop.f32.mrb[8].mxu1 }
 0x11c   :  { %v229_v43 = vpop.f32.mrb[9].mxu0  ;;  %v421_v45 = vrot.slane %v3291_v42, 1  ;;  %v358_v46 = vpop.f32.mrb[9].mxu1 }
 0x11d   :  { %v3268_v47 = vpop.f32.mrb[10].mxu0  ;;  %v418_v48 = vrot.slane %v358_v46, 1  ;;  %v3292_v49 = vpop.f32.mrb[10].mxu1 }
 0x11e   :  { %v232_v50 = vpop.f32.mrb[11].mxu0  ;;  %v422_v51 = vrot.slane %v3292_v49, 1  ;;  %v361_v52 = vpop.f32.mrb[11].mxu1 }
 0x11f   :  { %v419_v54 = vrot.slane %v361_v52, 1 }
 0x120   :  { %v423_v56 = vsel %vm405_vm1, %v421_v45, %v422_v51  ;;  %v4034_v57 = vadd.f32 %v3268_v47, %v422_v51 }
 0x121   :  { %v4036_v58 = vadd.f32 %v3267_v40, %v423_v56  ;;  %v420_v59 = vsel %vm405_vm1, %v418_v48, %v419_v54  ;;  %v4039_v60 = vadd.f32 %v419_v54, %v232_v50 }
 0x122   :  { %v4041_v61 = vadd.f32 %v420_v59, %v229_v43 }
 0x123   :  { %v3271_v62 = vpop.f32.mrb[12].mxu0  ;;  %v3295_v63 = vpop.f32.mrb[12].mxu1 }
 0x124   :  { %v245_v0 = vpop.f32.mrb[13].mxu0  ;;  %v427_v1 = vrot.slane %v3295_v63, 1  ;;  %v374_v2 = vpop.f32.mrb[13].mxu1 }
 0x125   :  { %v3272_v3 = vpop.f32.mrb[14].mxu0  ;;  %v424_v4 = vrot.slane %v374_v2, 1  ;;  %v3296_v5 = vpop.f32.mrb[14].mxu1 }
 0x126   :  { %v248_v6 = vpop.f32.mrb[15].mxu0  ;;  %v428_v7 = vrot.slane %v3296_v5, 1  ;;  %v377_v8 = vpop.f32.mrb[15].mxu1 }
 0x127   :  { %v425_v9 = vrot.slane %v377_v8, 1 }
 0x128   :  { %v429_v10 = vsel %vm405_vm1, %v427_v1, %v428_v7  ;;  %v4044_v11 = vadd.f32 %v3272_v3, %v428_v7 }
 0x129   :  { %v4046_v12 = vadd.f32 %v3271_v62, %v429_v10  ;;  %v426_v15 = vsel %vm405_vm1, %v424_v4, %v425_v9  ;;  %v4049_v18 = vadd.f32 %v425_v9, %v248_v6 }
 0x12a   :  { %v4051_v19 = vadd.f32 %v426_v15, %v245_v0 }
 0x12b   :  { %v3307_v20 = vpop.f32.mrb[16].mxu0  ;;  %v4053_v21 = vpop.f32.mrb[16].mxu1 }
 0x12c   :  { %v528_v22 = vpop.f32.mrb[17].mxu0  ;;  %v4055_v23 = vpop.f32.mrb[17].mxu1  ;;  %v611_v25 = vrot.slane %v3307_v20, 2 }
 0x12d   :  { %v3308_v24 = vpop.f32.mrb[18].mxu0  ;;  %v4057_v27 = vpop.f32.mrb[18].mxu1  ;;  %v608_v29 = vrot.slane %v528_v22, 2 }
 0x12e   :  { %v612_v26 = vrot.slane %v3308_v24, 2  ;;  %v531_v28 = vpop.f32.mrb[19].mxu0  ;;  %v4059_v31 = vpop.f32.mrb[19].mxu1 }
 0x12f   :  { %v609_v30 = vrot.slane %v531_v28, 2 }
 0x130   :  { %v613_v32 = vsel %vm607_vm2, %v611_v25, %v612_v26  ;;  %v651_v33 = vadd.f32 %v612_v26, %v4014_v13 }
 0x131   :  { %v650_v34 = vadd.f32 %v613_v32, %v4016_v14  ;;  %v610_v37 = vsel %vm607_vm2, %v608_v29, %v609_v30  ;;  %v649_v40 = vadd.f32 %v609_v30, %v4019_v16 }
 0x132   :  { %v672_v41 = vsel %vm607_vm2, %v651_v33, -inf  ;;  %v648_v42 = vadd.f32 %v610_v37, %v4021_v17 }
 0x133   :  { %v673_v43 = vmax.f32 %v650_v34, %v672_v41  ;;  %v664_v44 = vsel %vm607_vm2, %v649_v40, -inf  ;;  %v3311_v45 = vpop.f32.mrb[20].mxu0  ;;  %v4069_v47 = vpop.f32.mrb[20].mxu1 }
 0x134   :  { %v665_v46 = vmax.f32 %v648_v42, %v664_v44  ;;  %v544_v48 = vpop.f32.mrb[21].mxu0  ;;  %v4071_v13 = vpop.f32.mrb[21].mxu1  ;;  %v617_v51 = vrot.slane %v3311_v45, 2 }
 0x135   :  { %v674_v49 = vrot.slane %v673_v43, 4  ;;  %v3312_v14 = vpop.f32.mrb[22].mxu0  ;;  %v4073_v16 = vpop.f32.mrb[22].mxu1  ;;  %v614_v17 = vrot.slane %v544_v48, 2 }
 0x136   :  { %v666_v50 = vrot.slane %v665_v46, 4  ;;  %v618_v52 = vrot.slane %v3312_v14, 2  ;;  %v547_v53 = vpop.f32.mrb[23].mxu0  ;;  %v4075_v56 = vpop.f32.mrb[23].mxu1 }
 0x137   :  { %v675_v54 = vmax.f32 %v673_v43, %v674_v49  ;;  %v615_v55 = vrot.slane %v547_v53, 2 }
 0x138   :  { %v667_v59 = vmax.f32 %v665_v46, %v666_v50  ;;  %v619_v62 = vsel %vm607_vm2, %v617_v51, %v618_v52  ;;  %v655_v63 = vadd.f32 %v618_v52, %v4024_v35 }
 0x139   :  { %v676_v0 = vrot.slane %v675_v54, 2  ;;  %v654_v1 = vadd.f32 %v619_v62, %v4026_v36  ;;  %v616_v2 = vsel %vm607_vm2, %v614_v17, %v615_v55  ;;  %v653_v3 = vadd.f32 %v615_v55, %v4029_v38 }
 0x13a   :  { %v668_v4 = vrot.slane %v667_v59, 2  ;;  %v688_v5 = vsel %vm607_vm2, %v655_v63, -inf  ;;  %v652_v6 = vadd.f32 %v616_v2, %v4031_v39 }
 0x13b   :  { %v677_v7 = vmax.f32 %v675_v54, %v676_v0  ;;  %v689_v8 = vmax.f32 %v654_v1, %v688_v5  ;;  %v680_v9 = vsel %vm607_vm2, %v653_v3, -inf  ;;  %v3315_v10 = vpop.f32.mrb[24].mxu0  ;;  %v4085_v35 = vpop.f32.mrb[24].mxu1 }
 0x13c   :  { %v669_v15 = vmax.f32 %v667_v59, %v668_v4  ;;  %v681_v20 = vmax.f32 %v652_v6, %v680_v9  ;;  %v560_v22 = vpop.f32.mrb[25].mxu0  ;;  %v4087_v25 = vpop.f32.mrb[25].mxu1  ;;  %v623_v29 = vrot.slane %v3315_v10, 2  ;;  %v3638_v9 = vld [vmem:[#allocation5 + $0x80] sm:$0xff]  }
 0x13d   :  { %v678_v36 = vrot.slane %v677_v7, 1  ;;  %v690_v24 = vrot.slane %v689_v8, 4  ;;  %v3316_v38 = vpop.f32.mrb[26].mxu0  ;;  %v4089_v30 = vpop.f32.mrb[26].mxu1  ;;  %v620_v37 = vrot.slane %v560_v22, 2 }
 0x13e   :  { %v670_v26 = vrot.slane %v669_v15, 1  ;;  %v682_v28 = vrot.slane %v681_v20, 4  ;;  %v624_v39 = vrot.slane %v3316_v38, 2  ;;  %v563_v32 = vpop.f32.mrb[27].mxu0  ;;  %v4091_v41 = vpop.f32.mrb[27].mxu1 }
 0x13f   :  { %v679_v33 = vmax.f32 %v677_v7, %v678_v36  ;;  %v691_v34 = vmax.f32 %v689_v8, %v690_v24  ;;  %v621_v40 = vrot.slane %v563_v32, 2  ;;  %v3724_v8 = vmov 0.0  }
 0x140   :  { %v671_v42 = vmax.f32 %v669_v15, %v670_v26  ;;  %v683_v43 = vmax.f32 %v681_v20, %v682_v28  ;;  %v625_v44 = vsel %vm607_vm2, %v623_v29, %v624_v39  ;;  %v659_v45 = vadd.f32 %v624_v39, %v4034_v57  ;;  %3537 = vmatprep.subr.bf16.mxu1 %v3724_v8 }
 0x141   :  { %v692_v46 = vrot.slane %v691_v34, 2  ;;  %v658_v48 = vadd.f32 %v625_v44, %v4036_v58  ;;  %v622_v49 = vsel %vm607_vm2, %v620_v37, %v621_v40  ;;  %v657_v14 = vadd.f32 %v621_v40, %v4039_v60  ;;  %3538 = vmatpush3.bf16.msra.mxu1 %v3638_v9  ;;  %3553 = vmatprep.mubr.msk.bf16.mxu1 %vm3725_vm10, %v3724_v8 }
 0x142   :  { %v2532_v50 = vsel %vm2531_vm3, %v679_v33, %v671_v42  ;;  %v684_v51 = vrot.slane %v683_v43, 2  ;;  %v704_v52 = vsel %vm607_vm2, %v659_v45, -inf  ;;  %v656_v53 = vadd.f32 %v622_v49, %v4041_v61  ;;  %3539 = vmatprep.subr.bf16.mxu1 %v3724_v8 }
 0x143   :  { %v693_v54 = vmax.f32 %v691_v34, %v692_v46  ;;  %v705_v17 = vmax.f32 %v658_v48, %v704_v52  ;;  %v696_v55 = vsel %vm607_vm2, %v657_v14, -inf  ;;  %v3319_v59 = vpop.f32.mrb[28].mxu0  ;;  %v4102_v58 = vpop.f32.mrb[28].mxu1 }
 0x144   :  { %v685_v57 = vmax.f32 %v683_v43, %v684_v51  ;;  %v697_v62 = vmax.f32 %v656_v53, %v696_v55  ;;  %v576_v63 = vpop.f32.mrb[29].mxu0  ;;  %v629_v1 = vrot.slane %v3319_v59, 2  ;;  %v4104_v2 = vpop.f32.mrb[29].mxu1  ;;  %v3639_v51 = vld [vmem:[#allocation5 + $0x88] sm:$0xff]  }
 0x145   :  { %v694_v60 = vrot.slane %v693_v54, 1  ;;  %v706_v0 = vrot.slane %v705_v17, 4  ;;  %v3320_v3 = vpop.f32.mrb[30].mxu0  ;;  %v4106_v6 = vpop.f32.mrb[30].mxu1  ;;  %v626_v20 = vrot.slane %v576_v63, 2  ;;  %3540 = vmatpush3.bf16.msra.mxu1 %v3639_v51 }
 0x146   :  { %v686_v4 = vrot.slane %v685_v57, 1  ;;  %v698_v61 = vrot.slane %v697_v62, 4  ;;  %v630_v5 = vrot.slane %v3320_v3, 2  ;;  %v579_v7 = vpop.f32.mrb[31].mxu0  ;;  %v4109_v36 = vpop.f32.mrb[31].mxu1  ;;  %3541 = vmatprep.subr.bf16.mxu1 %v3724_v8 }
 0x147   :  { %v695_v10 = vmax.f32 %v693_v54, %v694_v60  ;;  %v707_v15 = vmax.f32 %v705_v17, %v706_v0  ;;  %v627_v22 = vrot.slane %v579_v7, 2 }
 0x148   :  { %v687_v24 = vmax.f32 %v685_v57, %v686_v4  ;;  %v699_v38 = vmax.f32 %v697_v62, %v698_v61  ;;  %v631_v26 = vsel %vm607_vm2, %v629_v1, %v630_v5  ;;  %v663_v28 = vadd.f32 %v630_v5, %v4044_v11 }
 0x149   :  { %v708_v29 = vrot.slane %v707_v15, 2  ;;  %v662_v39 = vadd.f32 %v631_v26, %v4046_v12  ;;  %v628_v32 = vsel %vm607_vm2, %v626_v20, %v627_v22  ;;  %v661_v33 = vadd.f32 %v627_v22, %v4049_v18 }
 0x14a   :  { %v2534_v34 = vsel %vm2533_vm4, %v687_v24, %v2532_v50  ;;  %v700_v37 = vrot.slane %v699_v38, 2  ;;  %v720_v40 = vsel %vm607_vm2, %v663_v28, -inf  ;;  %v660_v42 = vadd.f32 %v628_v32, %v4051_v19 }
 0x14b   :  { %v709_v43 = vmax.f32 %v707_v15, %v708_v29  ;;  %v721_v11 = vmax.f32 %v662_v39, %v720_v40  ;;  %v712_v44 = vsel %vm607_vm2, %v661_v33, -inf  ;;  %v3355_v45 = vpop.f32.mrb[32].mxu0  ;;  %v2536_v12 = vsel %vm2535_vm5, %v695_v10, %v2534_v34  ;;  %v3379_v18 = vpop.f32.mrb[32].mxu1  ;;  %v3640_v15 = vld [vmem:[#allocation5 + $0x90] sm:$0xff]  }
 0x14c   :  { %v701_v46 = vmax.f32 %v699_v38, %v700_v37  ;;  %v713_v48 = vmax.f32 %v660_v42, %v712_v44  ;;  %v1005_v49 = vrot.slane %v3355_v45, 1  ;;  %v923_v14 = vpop.f32.mrb[33].mxu0  ;;  %v1206_v53 = vrot.slane %v3379_v18, 2  ;;  %v1124_v17 = vpop.f32.mrb[33].mxu1  ;;  %3542 = vmatpush3.bf16.msra.mxu1 %v3640_v15 }
 0x14d   :  { %v710_v50 = vrot.slane %v709_v43, 1  ;;  %v722_v52 = vrot.slane %v721_v11, 4  ;;  %v1002_v54 = vrot.slane %v923_v14, 1  ;;  %v3356_v19 = vpop.f32.mrb[34].mxu0  ;;  %v1203_v57 = vrot.slane %v1124_v17, 2  ;;  %v3380_v63 = vpop.f32.mrb[34].mxu1  ;;  %3543 = vmatprep.subr.bf16.mxu1 %v3724_v8 }
 0x14e   :  { %v702_v55 = vrot.slane %v701_v46, 1  ;;  %v714_v59 = vrot.slane %v713_v48, 4  ;;  %v1006_v62 = vrot.slane %v3356_v19, 1  ;;  %v926_v60 = vpop.f32.mrb[35].mxu0  ;;  %v1207_v3 = vrot.slane %v3380_v63, 2  ;;  %v1127_v61 = vpop.f32.mrb[35].mxu1 }
 0x14f   :  { %v711_v0 = vmax.f32 %v709_v43, %v710_v50  ;;  %v723_v1 = vmax.f32 %v721_v11, %v722_v52  ;;  %v1003_v4 = vrot.slane %v926_v60, 1  ;;  %v3641_v11 = vld [vmem:[#allocation5 + $0x98] sm:$0xff]  }
 0x150   :  { %v703_v5 = vmax.f32 %v701_v46, %v702_v55  ;;  %v715_v7 = vmax.f32 %v713_v48, %v714_v59  ;;  %v1007_v9 = vsel %vm405_vm1, %v1005_v49, %v1006_v62  ;;  %v1045_v10 = vadd.f32 %v4057_v27, %v1006_v62  ;;  %3544 = vmatpush3.bf16.msra.mxu1 %v3641_v11 }
 0x151   :  { %v724_v20 = vrot.slane %v723_v1, 2  ;;  %v1044_v22 = vadd.f32 %v4053_v21, %v1007_v9  ;;  %v1208_v24 = vsel %vm607_vm2, %v1206_v53, %v1207_v3  ;;  %v1004_v38 = vsel %vm405_vm1, %v1002_v54, %v1003_v4  ;;  %3545 = vmatprep.subr.bf16.mxu1 %v3724_v8 }
 0x152   :  { %v716_v26 = vrot.slane %v715_v7, 2  ;;  %v4128_v28 = vadd.f32 %v1207_v3, %v1045_v10  ;;  %v1042_v29 = vadd.f32 %v1004_v38, %v4055_v23  ;;  %v1043_v39 = vadd.f32 %v1003_v4, %v4059_v31 }
 0x153   :  { %v725_v32 = vmax.f32 %v723_v1, %v724_v20  ;;  %v4132_v33 = vadd.f32 %v1208_v24, %v1044_v22  ;;  %v1204_v27 = vrot.slane %v1127_v61, 2  ;;  %v3359_v34 = vpop.f32.mrb[36].mxu0  ;;  %v2538_v37 = vsel %vm2537_vm6, %v703_v5, %v2536_v12  ;;  %v3383_v40 = vpop.f32.mrb[36].mxu1 }
 0x154   :  { %v717_v21 = vmax.f32 %v715_v7, %v716_v26  ;;  %v939_v42 = vpop.f32.mrb[37].mxu0  ;;  %v2540_v43 = vsel %vm2539_vm7, %v711_v0, %v2538_v37  ;;  %v1011_v31 = vrot.slane %v3359_v34, 1  ;;  %v1212_v45 = vrot.slane %v3383_v40, 2  ;;  %v1140_v46 = vpop.f32.mrb[37].mxu1 }
 0x155   :  { %v1205_v23 = vsel %vm607_vm2, %v1203_v57, %v1204_v27  ;;  %v4138_v44 = vadd.f32 %v1204_v27, %v1043_v39  ;;  %v3360_v48 = vpop.f32.mrb[38].mxu0  ;;  %v726_v49 = vrot.slane %v725_v32, 1  ;;  %v1209_v12 = vrot.slane %v1140_v46, 2  ;;  %v3384_v51 = vpop.f32.mrb[38].mxu1  ;;  %v3642_v57 = vld [vmem:[#allocation5 + $0xa0] sm:$0xff]  }
 0x156   :  { %v718_v18 = vrot.slane %v717_v21, 1  ;;  %v4140_v14 = vadd.f32 %v1205_v23, %v1042_v29  ;;  %v942_v50 = vpop.f32.mrb[39].mxu0  ;;  %v1008_v52 = vrot.slane %v939_v42, 1  ;;  %v1012_v53 = vrot.slane %v3360_v48, 1  ;;  %v1143_v19 = vpop.f32.mrb[39].mxu1  ;;  %3546 = vmatpush3.bf16.msra.mxu1 %v3642_v57 }
 0x157   :  { %v1213_v54 = vrot.slane %v3384_v51, 2  ;;  %v1009_v17 = vrot.slane %v942_v50, 1  ;;  %v1210_v59 = vrot.slane %v1143_v19, 2  ;;  %v727_v5 = vmax.f32 %v725_v32, %v726_v49  ;;  %3547 = vmatprep.subr.bf16.mxu1 %v3724_v8 }
 0x158   :  { %v719_v55 = vmax.f32 %v717_v21, %v718_v18  ;;  %v1013_v62 = vsel %vm405_vm1, %v1011_v31, %v1012_v53  ;;  %v1049_v63 = vadd.f32 %v4073_v16, %v1012_v53 }
 0x159   :  { %v1214_v60 = vsel %vm607_vm2, %v1212_v45, %v1213_v54  ;;  %v1010_v0 = vsel %vm405_vm1, %v1008_v52, %v1009_v17  ;;  %v1048_v1 = vadd.f32 %v4069_v47, %v1013_v62  ;;  %v1047_v4 = vadd.f32 %v1009_v17, %v4075_v56  ;;  %v3643_v56 = vld [vmem:[#allocation5 + $0xa8] sm:$0xff]  }
 0x15a   :  { %v1046_v3 = vadd.f32 %v1010_v0, %v4071_v13  ;;  %v1211_v61 = vsel %vm607_vm2, %v1209_v12, %v1210_v59  ;;  %v4151_v7 = vadd.f32 %v1213_v54, %v1049_v63  ;;  %v2542_v10 = vsel %vm2541_vm8, %v719_v55, %v2540_v43  ;;  %3548 = vmatpush3.bf16.msra.mxu1 %v3643_v56  ;;  %v3644_v43 = vld [vmem:[#allocation5 + $0xb0] sm:$0xff]  }
 0x15b   :  { %v3363_v9 = vpop.f32.mrb[40].mxu0  ;;  %v4155_v16 = vadd.f32 %v1214_v60, %v1048_v1  ;;  %v4159_v47 = vadd.f32 %v1210_v59, %v1047_v4  ;;  %v3387_v13 = vpop.f32.mrb[40].mxu1  ;;  %v4162_v26 = vsel %vm2543_vm9, %v727_v5, %v2542_v10  ;;  %3549 = vmatprep.subr.bf16.mxu1 %v3724_v8 }
 0x15c   :  { %v4157_v15 = vadd.f32 %v1211_v61, %v1046_v3  ;;  %v955_v20 = vpop.f32.mrb[41].mxu0  ;;  %v1218_v22 = vrot.slane %v3387_v13, 2  ;;  %v1156_v24 = vpop.f32.mrb[41].mxu1  ;;  %v1017_v29 = vrot.slane %v3363_v9, 1 }
 0x15d   :  { %v3364_v38 = vpop.f32.mrb[42].mxu0  ;;  %v1215_v39 = vrot.slane %v1156_v24, 2  ;;  %v3388_v27 = vpop.f32.mrb[42].mxu1  ;;  %v1014_v37 = vrot.slane %v955_v20, 1 }
 0x15e   :  { %v1018_v32 = vrot.slane %v3364_v38, 1  ;;  %v958_v34 = vpop.f32.mrb[43].mxu0  ;;  %v1219_v21 = vrot.slane %v3388_v27, 2  ;;  %v1159_v42 = vpop.f32.mrb[43].mxu1  ;;  %3550 = vmatpush3.bf16.msra.mxu1 %v3644_v43 }
 0x15f   :  { %v1015_v40 = vrot.slane %v958_v34, 1  ;;  %v1216_v31 = vrot.slane %v1159_v42, 2  ;;  %3551 = vmatprep.subr.bf16.mxu1 %v3724_v8 }
 0x160   :  { %v1019_v11 = vsel %vm405_vm1, %v1017_v29, %v1018_v32  ;;  %v1053_v23 = vadd.f32 %v4089_v30, %v1018_v32  ;;  %v1220_v46 = vsel %vm607_vm2, %v1218_v22, %v1219_v21  ;;  %v3645_v30 = vld [vmem:[#allocation5 + $0xb8] sm:$0xff]  }
 0x161   :  { %v1052_v45 = vadd.f32 %v4085_v35, %v1019_v11  ;;  %v1016_v48 = vsel %vm405_vm1, %v1014_v37, %v1015_v40  ;;  %v1051_v49 = vadd.f32 %v1015_v40, %v4091_v41  ;;  %v1217_v51 = vsel %vm607_vm2, %v1215_v39, %v1216_v31 }
 0x162   :  { %v4172_v18 = vadd.f32 %v1219_v21, %v1053_v23  ;;  %v1050_v12 = vadd.f32 %v1016_v48, %v4087_v25  ;;  %3552 = vmatpush3.bf16.msra.mxu1 %v3645_v30 }
 0x163   :  { %v4176_v50 = vadd.f32 %v1220_v46, %v1052_v45  ;;  %v4178_v52 = vadd.f32 %v1216_v31, %v1051_v49  ;;  %v3367_v53 = vpop.f32.mrb[44].mxu0  ;;  %v3391_v54 = vpop.f32.mrb[44].mxu1 }
 0x164   :  { %v4181_v35 = vadd.f32 %v1217_v51, %v1050_v12  ;;  %v971_v17 = vpop.f32.mrb[45].mxu0  ;;  %v1224_v41 = vrot.slane %v3391_v54, 2  ;;  %v1172_v19 = vpop.f32.mrb[45].mxu1  ;;  %v1023_v59 = vrot.slane %v3367_v53, 1 }
 0x165   :  { %v3368_v55 = vpop.f32.mrb[46].mxu0  ;;  %v1221_v25 = vrot.slane %v1172_v19, 2  ;;  %v3392_v62 = vpop.f32.mrb[46].mxu1  ;;  %v1020_v60 = vrot.slane %v971_v17, 1 }
 0x166   :  { %v1024_v57 = vrot.slane %v3368_v55, 1  ;;  %v974_v63 = vpop.f32.mrb[47].mxu0  ;;  %v1225_v0 = vrot.slane %v3392_v62, 2  ;;  %v1175_v3 = vpop.f32.mrb[47].mxu1 }
 0x167   :  { %v1021_v1 = vrot.slane %v974_v63, 1  ;;  %v1222_v61 = vrot.slane %v1175_v3, 2 }
 0x168   :  { %v1025_v4 = vsel %vm405_vm1, %v1023_v59, %v1024_v57  ;;  %v1057_v8 = vadd.f32 %v4106_v6, %v1024_v57  ;;  %v1226_v9 = vsel %vm607_vm2, %v1224_v41, %v1225_v0 }
 0x169   :  { %v1056_v5 = vadd.f32 %v4102_v58, %v1025_v4  ;;  %v1022_v10 = vsel %vm405_vm1, %v1020_v60, %v1021_v1  ;;  %v1055_v13 = vadd.f32 %v1021_v1, %v4109_v36  ;;  %v1223_v22 = vsel %vm607_vm2, %v1221_v25, %v1222_v61 }
 0x16a   :  { %v4189_v20 = vadd.f32 %v1225_v0, %v1057_v8  ;;  %v1054_v56 = vadd.f32 %v1022_v10, %v4104_v2 }
 0x16b   :  { %v4193_v24 = vadd.f32 %v1226_v9, %v1056_v5  ;;  %v4195_v38 = vadd.f32 %v1222_v61, %v1055_v13  ;;  %v3403_v6 = vpop.f32.mrb[48].mxu0  ;;  %v4199_v58 = vpop.f32.mrb[48].mxu1 }
 0x16c   :  { %v4197_v29 = vadd.f32 %v1223_v22, %v1054_v56  ;;  %v1325_v39 = vpop.f32.mrb[49].mxu0  ;;  %v4201_v32 = vpop.f32.mrb[49].mxu1  ;;  %v1408_v36 = vrot.slane %v3403_v6, 3 }
 0x16d   :  { %v3404_v27 = vpop.f32.mrb[50].mxu0  ;;  %v4203_v37 = vpop.f32.mrb[50].mxu1  ;;  %v1405_v21 = vrot.slane %v1325_v39, 3 }
 0x16e   :  { %v1409_v34 = vrot.slane %v3404_v27, 3  ;;  %v1328_v2 = vpop.f32.mrb[51].mxu0  ;;  %v4205_v42 = vpop.f32.mrb[51].mxu1 }
 0x16f   :  { %v1406_v40 = vrot.slane %v1328_v2, 3  ;;  %v2580_v2 = vlaneseq }
 0x170   :  { %v1410_v43 = vsel %vm1404_vm11, %v1408_v36, %v1409_v34  ;;  %v1448_v11 = vadd.f32 %v1409_v34, %v4128_v28 }
 0x171   :  { %v1447_v23 = vadd.f32 %v1410_v43, %v4132_v33  ;;  %v1407_v31 = vsel %vm1404_vm11, %v1405_v21, %v1406_v40  ;;  %v1446_v45 = vadd.f32 %v1406_v40, %v4138_v44 }
 0x172   :  { %v1469_v46 = vsel %vm1404_vm11, %v1448_v11, -inf  ;;  %v1445_v48 = vadd.f32 %v1407_v31, %v4140_v14 }
 0x173   :  { %v1470_v49 = vmax.f32 %v1447_v23, %v1469_v46  ;;  %v1461_v12 = vsel %vm1404_vm11, %v1446_v45, -inf  ;;  %v3407_v51 = vpop.f32.mrb[52].mxu0  ;;  %v4215_v53 = vpop.f32.mrb[52].mxu1 }
 0x174   :  { %v1462_v30 = vmax.f32 %v1445_v48, %v1461_v12  ;;  %v1341_v54 = vpop.f32.mrb[53].mxu0  ;;  %v4217_v28 = vpop.f32.mrb[53].mxu1  ;;  %v1414_v19 = vrot.slane %v3407_v51, 3 }
 0x175   :  { %v1471_v17 = vrot.slane %v1470_v49, 4  ;;  %v3408_v33 = vpop.f32.mrb[54].mxu0  ;;  %v4219_v44 = vpop.f32.mrb[54].mxu1  ;;  %v1411_v14 = vrot.slane %v1341_v54, 3 }
 0x176   :  { %v1463_v41 = vrot.slane %v1462_v30, 4  ;;  %v1415_v55 = vrot.slane %v3408_v33, 3  ;;  %v1344_v59 = vpop.f32.mrb[55].mxu0  ;;  %v4221_v62 = vpop.f32.mrb[55].mxu1 }
 0x177   :  { %v1472_v25 = vmax.f32 %v1470_v49, %v1471_v17  ;;  %v1412_v57 = vrot.slane %v1344_v59, 3 }
 0x178   :  { %v1464_v63 = vmax.f32 %v1462_v30, %v1463_v41  ;;  %v1416_v60 = vsel %vm1404_vm11, %v1414_v19, %v1415_v55  ;;  %v1452_v0 = vadd.f32 %v1415_v55, %v4151_v7 }
 0x179   :  { %v1473_v1 = vrot.slane %v1472_v25, 2  ;;  %v1451_v3 = vadd.f32 %v1416_v60, %v4155_v16  ;;  %v1413_v4 = vsel %vm1404_vm11, %v1411_v14, %v1412_v57  ;;  %v1450_v8 = vadd.f32 %v1412_v57, %v4159_v47 }
 0x17a   :  { %v1465_v61 = vrot.slane %v1464_v63, 2  ;;  %v1485_v5 = vsel %vm1404_vm11, %v1452_v0, -inf  ;;  %v1449_v9 = vadd.f32 %v1413_v4, %v4157_v15 }
 0x17b   :  { %v1474_v10 = vmax.f32 %v1472_v25, %v1473_v1  ;;  %v1486_v13 = vmax.f32 %v1451_v3, %v1485_v5  ;;  %v1477_v56 = vsel %vm1404_vm11, %v1450_v8, -inf  ;;  %v3411_v22 = vpop.f32.mrb[56].mxu0  ;;  %v4231_v7 = vpop.f32.mrb[56].mxu1  ;;  %v4252_v5 = vshrl.u32 %v2580_v2, 7 }
 0x17c   :  { %v1466_v6 = vmax.f32 %v1464_v63, %v1465_v61  ;;  %v1478_v39 = vmax.f32 %v1449_v9, %v1477_v56  ;;  %v1357_v27 = vpop.f32.mrb[57].mxu0  ;;  %v4233_v34 = vpop.f32.mrb[57].mxu1  ;;  %v1420_v43 = vrot.slane %v3411_v22, 3 }
 0x17d   :  { %v1475_v16 = vrot.slane %v1474_v10, 1  ;;  %v1487_v36 = vrot.slane %v1486_v13, 4  ;;  %v3412_v47 = vpop.f32.mrb[58].mxu0  ;;  %v4235_v11 = vpop.f32.mrb[58].mxu1  ;;  %v1417_v46 = vrot.slane %v1357_v27, 3 }
 0x17e   :  { %v1467_v21 = vrot.slane %v1466_v6, 1  ;;  %v1479_v40 = vrot.slane %v1478_v39, 4  ;;  %v1421_v15 = vrot.slane %v3412_v47, 3  ;;  %v1360_v23 = vpop.f32.mrb[59].mxu0  ;;  %v4237_v49 = vpop.f32.mrb[59].mxu1 }
 0x17f   :  { %v1476_v31 = vmax.f32 %v1474_v10, %v1475_v16  ;;  %v1488_v45 = vmax.f32 %v1486_v13, %v1487_v36  ;;  %v1418_v48 = vrot.slane %v1360_v23, 3 }
 0x180   :  { %v1468_v12 = vmax.f32 %v1466_v6, %v1467_v21  ;;  %v1480_v51 = vmax.f32 %v1478_v39, %v1479_v40  ;;  %v1422_v30 = vsel %vm1404_vm11, %v1420_v43, %v1421_v15  ;;  %v1456_v54 = vadd.f32 %v1421_v15, %v4172_v18 }
 0x181   :  { %v1489_v17 = vrot.slane %v1488_v45, 2  ;;  %v1455_v33 = vadd.f32 %v1422_v30, %v4176_v50  ;;  %v1419_v41 = vsel %vm1404_vm11, %v1417_v46, %v1418_v48  ;;  %v1454_v19 = vadd.f32 %v1418_v48, %v4178_v52 }
 0x182   :  { %v2554_v55 = vsel %vm2531_vm3, %v1476_v31, %v1468_v12  ;;  %v1481_v59 = vrot.slane %v1480_v51, 2  ;;  %v1501_v25 = vsel %vm1404_vm11, %v1456_v54, -inf  ;;  %v1453_v14 = vadd.f32 %v1419_v41, %v4181_v35 }
 0x183   :  { %v1490_v57 = vmax.f32 %v1488_v45, %v1489_v17  ;;  %v1502_v63 = vmax.f32 %v1455_v33, %v1501_v25  ;;  %v1493_v60 = vsel %vm1404_vm11, %v1454_v19, -inf  ;;  %v3415_v0 = vpop.f32.mrb[60].mxu0  ;;  %v4248_v3 = vpop.f32.mrb[60].mxu1 }
 0x184   :  { %v1482_v18 = vmax.f32 %v1480_v51, %v1481_v59  ;;  %v1494_v1 = vmax.f32 %v1453_v14, %v1493_v60  ;;  %v1373_v50 = vpop.f32.mrb[61].mxu0  ;;  %v4250_v52 = vpop.f32.mrb[61].mxu1  ;;  %v1426_v35 = vrot.slane %v3415_v0, 3 }
 0x185   :  { %v1491_v4 = vrot.slane %v1490_v57, 1  ;;  %v1503_v8 = vrot.slane %v1502_v63, 4  ;;  %v3416_v61 = vpop.f32.mrb[62].mxu0  ;;  %v4254_v56 = vpop.f32.mrb[62].mxu1  ;;  %v1423_v27 = vrot.slane %v1373_v50, 3 }
 0x186   :  { %v1483_v9 = vrot.slane %v1482_v18, 1  ;;  %v1495_v10 = vrot.slane %v1494_v1, 4  ;;  %v1427_v13 = vrot.slane %v3416_v61, 3  ;;  %v1376_v22 = vpop.f32.mrb[63].mxu0  ;;  %v4256_v36 = vpop.f32.mrb[63].mxu1 }
 0x187   :  { %v1492_v6 = vmax.f32 %v1490_v57, %v1491_v4  ;;  %v1504_v39 = vmax.f32 %v1502_v63, %v1503_v8  ;;  %v1424_v16 = vrot.slane %v1376_v22, 3 }
 0x188   :  { %v1484_v47 = vmax.f32 %v1482_v18, %v1483_v9  ;;  %v1496_v21 = vmax.f32 %v1494_v1, %v1495_v10  ;;  %v1428_v40 = vsel %vm1404_vm11, %v1426_v35, %v1427_v13  ;;  %v1460_v2 = vadd.f32 %v1427_v13, %v4189_v20 }
 0x189   :  { %v1505_v43 = vrot.slane %v1504_v39, 2  ;;  %v1459_v15 = vadd.f32 %v1428_v40, %v4193_v24  ;;  %v1425_v23 = vsel %vm1404_vm11, %v1423_v27, %v1424_v16  ;;  %v1458_v31 = vadd.f32 %v1424_v16, %v4195_v38  ;;  %v4277_v40 = vld [vmem:[%s4412_s2] sm:$0x7] }
 0x18a   :  { %v2555_v45 = vsel %vm2533_vm4, %v1484_v47, %v2554_v55  ;;  %v1497_v46 = vrot.slane %v1496_v21, 2  ;;  %v1517_v48 = vsel %vm1404_vm11, %v1460_v2, -inf  ;;  %v1457_v12 = vadd.f32 %v1425_v23, %v4197_v29 }
 0x18b   :  { %v1506_v51 = vmax.f32 %v1504_v39, %v1505_v43  ;;  %v1518_v30 = vmax.f32 %v1459_v15, %v1517_v48  ;;  %v1509_v54 = vsel %vm1404_vm11, %v1458_v31, -inf  ;;  %v3451_v17 = vpop.f32.mrb[64].mxu0  ;;  %v2556_v20 = vsel %vm2535_vm5, %v1492_v6, %v2555_v45  ;;  %v3475_v19 = vpop.f32.mrb[64].mxu1 }
 0x18c   :  { %v1498_v33 = vmax.f32 %v1496_v21, %v1497_v46  ;;  %v1510_v24 = vmax.f32 %v1457_v12, %v1509_v54  ;;  %v1802_v41 = vrot.slane %v3451_v17, 1  ;;  %v1720_v59 = vpop.f32.mrb[65].mxu0  ;;  %v2582_v38 = vsub.s32 0, %v4252_v5  ;;  %v1921_v63 = vpop.f32.mrb[65].mxu1 }
 0x18d   :  { %v1507_v55 = vrot.slane %v1506_v51, 1  ;;  %v1519_v25 = vrot.slane %v1518_v30, 4  ;;  %v2003_v14 = vrot.slane %v3475_v19, 2  ;;  %v1799_v57 = vrot.slane %v1720_v59, 1  ;;  %v3452_v29 = vpop.f32.mrb[66].mxu0  ;;  %v3476_v50 = vpop.f32.mrb[66].mxu1 }
 0x18e   :  { %v1499_v60 = vrot.slane %v1498_v33, 1  ;;  %v1511_v0 = vrot.slane %v1510_v24, 4  ;;  %v2000_v18 = vrot.slane %v1921_v63, 2  ;;  %v1803_v1 = vrot.slane %v3452_v29, 1  ;;  %v1723_v4 = vpop.f32.mrb[67].mxu0  ;;  %v1924_v35 = vpop.f32.mrb[67].mxu1 }
 0x18f   :  { %v1508_v8 = vmax.f32 %v1506_v51, %v1507_v55  ;;  %v1520_v61 = vmax.f32 %v1518_v30, %v1519_v25  ;;  %v2004_v9 = vrot.slane %v3476_v50, 2  ;;  %v1800_v10 = vrot.slane %v1723_v4, 1 }
 0x190   :  { %v1500_v13 = vmax.f32 %v1498_v33, %v1499_v60  ;;  %v1512_v22 = vmax.f32 %v1510_v24, %v1511_v0  ;;  %v1804_v6 = vsel %vm405_vm1, %v1802_v41, %v1803_v1  ;;  %v1842_v39 = vadd.f32 %v4203_v37, %v1803_v1 }
 0x191   :  { %v1521_v27 = vrot.slane %v1520_v61, 2  ;;  %v1841_v16 = vadd.f32 %v4199_v58, %v1804_v6  ;;  %v2005_v47 = vsel %vm607_vm2, %v2003_v14, %v2004_v9  ;;  %v1801_v21 = vsel %vm405_vm1, %v1799_v57, %v1800_v10 }
 0x192   :  { %v1513_v2 = vrot.slane %v1512_v22, 2  ;;  %v4279_v43 = vadd.f32 %v2004_v9, %v1842_v39  ;;  %v1839_v15 = vadd.f32 %v1801_v21, %v4201_v32  ;;  %v1840_v23 = vadd.f32 %v1800_v10, %v4205_v42 }
 0x193   :  { %v1522_v37 = vmax.f32 %v1520_v61, %v1521_v27  ;;  %v4283_v31 = vadd.f32 %v2005_v47, %v1841_v16  ;;  %v2001_v58 = vrot.slane %v1924_v35, 2  ;;  %v3455_v45 = vpop.f32.mrb[68].mxu0  ;;  %v2557_v46 = vsel %vm2537_vm6, %v1500_v13, %v2556_v20  ;;  %v3479_v12 = vpop.f32.mrb[68].mxu1 }
 0x194   :  { %v1514_v48 = vmax.f32 %v1512_v22, %v1513_v2  ;;  %v1736_v51 = vpop.f32.mrb[69].mxu0  ;;  %v2558_v30 = vsel %vm2539_vm7, %v1508_v8, %v2557_v46  ;;  %v2583_v54 = vrot.slane %v4277_v40, %v2582_v38  ;;  %v2586_v17 = vsub.s32 1, %v4252_v5  ;;  %v1937_v41 = vpop.f32.mrb[69].mxu1 }
 0x195   :  { %v2002_v32 = vsel %vm607_vm2, %v2000_v18, %v2001_v58  ;;  %v4290_v33 = vadd.f32 %v2001_v58, %v1840_v23  ;;  %v1808_v42 = vrot.slane %v3455_v45, 1  ;;  %v2009_v24 = vrot.slane %v3479_v12, 2  ;;  %v3456_v19 = vpop.f32.mrb[70].mxu0  ;;  %v3480_v14 = vpop.f32.mrb[70].mxu1 }
 0x196   :  { %v1523_v59 = vrot.slane %v1522_v37, 1  ;;  %v1515_v55 = vrot.slane %v1514_v48, 1  ;;  %v4292_v20 = vadd.f32 %v2002_v32, %v1839_v15  ;;  %v2006_v25 = vrot.slane %v1937_v41, 2  ;;  %v1739_v57 = vpop.f32.mrb[71].mxu0  ;;  %v1940_v0 = vpop.f32.mrb[71].mxu1 }
 0x197   :  { %v1805_v63 = vrot.slane %v1736_v51, 1  ;;  %v1809_v29 = vrot.slane %v3456_v19, 1  ;;  %v2010_v38 = vrot.slane %v3480_v14, 2  ;;  %v1806_v60 = vrot.slane %v1739_v57, 1 }
 0x198   :  { %v1516_v1 = vmax.f32 %v1514_v48, %v1515_v55  ;;  %v2007_v18 = vrot.slane %v1940_v0, 2  ;;  %v2587_v50 = vrot.slane %v4277_v40, %v2586_v17  ;;  %v1524_v27 = vmax.f32 %v1522_v37, %v1523_v59 }
 0x199   :  { %v1810_v4 = vsel %vm405_vm1, %v1808_v42, %v1809_v29  ;;  %v1846_v8 = vadd.f32 %v4219_v44, %v1809_v29  ;;  %v2011_v61 = vsel %vm607_vm2, %v2009_v24, %v2010_v38  ;;  %v1807_v9 = vsel %vm405_vm1, %v1805_v63, %v1806_v60 }
 0x19a   :  { %v1845_v10 = vadd.f32 %v4215_v53, %v1810_v4  ;;  %v1843_v35 = vadd.f32 %v1807_v9, %v4217_v28  ;;  %v1844_v13 = vadd.f32 %v1806_v60, %v4221_v62  ;;  %v2008_v22 = vsel %vm607_vm2, %v2006_v25, %v2007_v18 }
 0x19b   :  { %v4303_v6 = vadd.f32 %v2010_v38, %v1846_v8  ;;  %v3459_v39 = vpop.f32.mrb[72].mxu0  ;;  %v2559_v16 = vsel %vm2541_vm8, %v1516_v1, %v2558_v30  ;;  %v2595_v44 = vadd.f32 %v2583_v54, %v4162_v26  ;;  %v3483_v53 = vpop.f32.mrb[72].mxu1 }
 0x19c   :  { %v4307_v47 = vadd.f32 %v2011_v61, %v1845_v10  ;;  %v4309_v21 = vadd.f32 %v2008_v22, %v1843_v35  ;;  %v4311_v2 = vadd.f32 %v2007_v18, %v1844_v13  ;;  %v1752_v28 = vpop.f32.mrb[73].mxu0  ;;  %v2015_v15 = vrot.slane %v3483_v53, 2  ;;  %v1953_v62 = vpop.f32.mrb[73].mxu1 }
 0x19d   :  { %v3460_v23 = vpop.f32.mrb[74].mxu0  ;;  %v2560_v58 = vsel %vm2543_vm9, %v1524_v27, %v2559_v16  ;;  %v1814_v45 = vrot.slane %v3459_v39, 1  ;;  %v2012_v46 = vrot.slane %v1953_v62, 2  ;;  %v3484_v48 = vpop.f32.mrb[74].mxu1  ;;  %v1811_v26 = vrot.slane %v1752_v28, 1 }
 0x19e   :  { %v1815_v37 = vrot.slane %v3460_v23, 1  ;;  %v1755_v12 = vpop.f32.mrb[75].mxu0  ;;  %v2596_v51 = vadd.f32 %v2587_v50, %v2560_v58  ;;  %v2016_v30 = vrot.slane %v3484_v48, 2  ;;  %v1956_v17 = vpop.f32.mrb[75].mxu1  ;;  %v2598_v32 = vpack.c.bf16 %v2595_v44, %v2595_v44 }
 0x19f   :  { %v1812_v54 = vrot.slane %v1755_v12, 1  ;;  %v2013_v41 = vrot.slane %v1956_v17, 2 }
 0x1a0   :  { %v1816_v42 = vsel %vm405_vm1, %v1814_v45, %v1815_v37  ;;  %v1850_v24 = vadd.f32 %v4235_v11, %v1815_v37  ;;  %v2599_v19 = vpack.c.bf16 %v2596_v51, %v2596_v51  ;;  %v2017_v55 = vsel %vm607_vm2, %v2015_v15, %v2016_v30 }
 0x1a1   :  { %v1849_v59 = vadd.f32 %v4231_v7, %v1816_v42  ;;  %v1813_v25 = vsel %vm405_vm1, %v1811_v26, %v1812_v54  ;;  %v1848_v14 = vadd.f32 %v1812_v54, %v4237_v49  ;;  %v2014_v29 = vsel %vm607_vm2, %v2012_v46, %v2013_v41 }
 0x1a2   :  { %v4320_v57 = vadd.f32 %v2016_v30, %v1850_v24  ;;  %v1847_v63 = vadd.f32 %v1813_v25, %v4233_v34  ;;  %2832 = vmatprep.mubr.bf16.mxu0 %v2599_v19 }
 0x1a3   :  { %v4324_v38 = vadd.f32 %v2017_v55, %v1849_v59  ;;  %v4326_v11 = vadd.f32 %v2013_v41, %v1848_v14  ;;  %2833 = vmatmul.mubr.bf16.vlgmr.msra.gmra.mrb[96].mxu0 %v2598_v32  ;;  %v3463_v60 = vpop.f32.mrb[76].mxu0  ;;  %v3487_v0 = vpop.f32.mrb[76].mxu1 }
 0x1a4   :  { %v4328_v7 = vadd.f32 %v2014_v29, %v1847_v63  ;;  %v1768_v1 = vpop.f32.mrb[77].mxu0  ;;  %v2021_v18 = vrot.slane %v3487_v0, 2  ;;  %v1969_v50 = vpop.f32.mrb[77].mxu1  ;;  %v1820_v4 = vrot.slane %v3463_v60, 1 }
 0x1a5   :  { %v3464_v49 = vpop.f32.mrb[78].mxu0  ;;  %v2018_v8 = vrot.slane %v1969_v50, 2  ;;  %v3488_v34 = vpop.f32.mrb[78].mxu1  ;;  %v1817_v10 = vrot.slane %v1768_v1, 1 }
 0x1a6   :  { %v1821_v61 = vrot.slane %v3464_v49, 1  ;;  %v1771_v9 = vpop.f32.mrb[79].mxu0  ;;  %v2022_v35 = vrot.slane %v3488_v34, 2  ;;  %v1972_v22 = vpop.f32.mrb[79].mxu1 }
 0x1a7   :  { %v1818_v13 = vrot.slane %v1771_v9, 1  ;;  %v2019_v16 = vrot.slane %v1972_v22, 2 }
 0x1a8   :  { %v1822_v39 = vsel %vm405_vm1, %v1820_v4, %v1821_v61  ;;  %v1854_v27 = vadd.f32 %v4254_v56, %v1821_v61  ;;  %v2023_v53 = vsel %vm607_vm2, %v2021_v18, %v2022_v35 }
 0x1a9   :  { %v1853_v44 = vadd.f32 %v4248_v3, %v1822_v39  ;;  %v1819_v28 = vsel %vm405_vm1, %v1817_v10, %v1818_v13  ;;  %v1852_v15 = vadd.f32 %v1818_v13, %v4256_v36  ;;  %v2020_v58 = vsel %vm607_vm2, %v2018_v8, %v2019_v16 }
 0x1aa   :  { %v4336_v62 = vadd.f32 %v2022_v35, %v1854_v27  ;;  %v1851_v23 = vadd.f32 %v1819_v28, %v4250_v52 }
 0x1ab   :  { %v4340_v45 = vadd.f32 %v2023_v53, %v1853_v44  ;;  %v4342_v46 = vadd.f32 %v2019_v16, %v1852_v15  ;;  %v3499_v56 = vpop.f32.mrb[80].mxu0  ;;  %v3523_v3 = vpop.f32.mrb[80].mxu1 }
 0x1ac   :  { %v4344_v37 = vadd.f32 %v2020_v58, %v1851_v23  ;;  %v2122_v48 = vpop.f32.mrb[81].mxu0  ;;  %v2406_v12 = vrot.slane %v3523_v3, 4  ;;  %v2323_v51 = vpop.f32.mrb[81].mxu1  ;;  %v2204_v30 = vrot.slane %v3499_v56, 3 }
 0x1ad   :  { %v3500_v26 = vpop.f32.mrb[82].mxu0  ;;  %v2403_v36 = vrot.slane %v2323_v51, 4  ;;  %v3524_v17 = vpop.f32.mrb[82].mxu1  ;;  %v2201_v32 = vrot.slane %v2122_v48, 3 }
 0x1ae   :  { %v2205_v54 = vrot.slane %v3500_v26, 3  ;;  %v2125_v52 = vpop.f32.mrb[83].mxu0  ;;  %v2407_v42 = vrot.slane %v3524_v17, 4  ;;  %v2326_v41 = vpop.f32.mrb[83].mxu1 }
 0x1af   :  { %v2202_v24 = vrot.slane %v2125_v52, 3  ;;  %v2404_v55 = vrot.slane %v2326_v41, 4 }
 0x1b0   :  { %v2206_v19 = vsel %vm1404_vm11, %v2204_v30, %v2205_v54  ;;  %v2244_v59 = vadd.f32 %v2205_v54, %v4279_v43  ;;  %v2408_v14 = vsel %vm2402_vm12, %v2406_v12, %v2407_v42 }
 0x1b1   :  { %v2243_v25 = vadd.f32 %v2206_v19, %v4283_v31  ;;  %v2203_v63 = vsel %vm1404_vm11, %v2201_v32, %v2202_v24  ;;  %v2242_v29 = vadd.f32 %v2202_v24, %v4290_v33  ;;  %v2405_v1 = vsel %vm2402_vm12, %v2403_v36, %v2404_v55 }
 0x1b2   :  { %v2446_v60 = vadd.f32 %v2407_v42, %v2244_v59  ;;  %v2241_v0 = vadd.f32 %v2203_v63, %v4292_v20 }
 0x1b3   :  { %v2445_v18 = vadd.f32 %v2408_v14, %v2243_v25  ;;  %v2444_v50 = vadd.f32 %v2404_v55, %v2242_v29  ;;  %v3503_v49 = vpop.f32.mrb[84].mxu0  ;;  %v3527_v8 = vpop.f32.mrb[84].mxu1 }
 0x1b4   :  { %v2467_v4 = vsel %vm2402_vm12, %v2446_v60, -inf  ;;  %v2443_v43 = vadd.f32 %v2405_v1, %v2241_v0  ;;  %v2138_v61 = vpop.f32.mrb[85].mxu0  ;;  %v2412_v9 = vrot.slane %v3527_v8, 4  ;;  %v2339_v10 = vpop.f32.mrb[85].mxu1  ;;  %v2210_v13 = vrot.slane %v3503_v49, 3 }
 0x1b5   :  { %v2468_v31 = vmax.f32 %v2445_v18, %v2467_v4  ;;  %v2459_v34 = vsel %vm2402_vm12, %v2444_v50, -inf  ;;  %v3504_v35 = vpop.f32.mrb[86].mxu0  ;;  %v2207_v22 = vrot.slane %v2138_v61, 3  ;;  %v3528_v39 = vpop.f32.mrb[86].mxu1  ;;  %v2409_v44 = vrot.slane %v2339_v10, 4 }
 0x1b6   :  { %v2460_v33 = vmax.f32 %v2443_v43, %v2459_v34  ;;  %v2211_v20 = vrot.slane %v3504_v35, 3  ;;  %v2141_v27 = vpop.f32.mrb[87].mxu0  ;;  %v2413_v53 = vrot.slane %v3528_v39, 4  ;;  %v2342_v15 = vpop.f32.mrb[87].mxu1 }
 0x1b7   :  { %v2469_v16 = vrot.slane %v2468_v31, 4  ;;  %v2208_v28 = vrot.slane %v2141_v27, 3  ;;  %v2410_v3 = vrot.slane %v2342_v15, 4 }
 0x1b8   :  { %v2461_v23 = vrot.slane %v2460_v33, 4  ;;  %v2212_v58 = vsel %vm1404_vm11, %v2210_v13, %v2211_v20  ;;  %v2248_v56 = vadd.f32 %v2211_v20, %v4303_v6  ;;  %v2414_v51 = vsel %vm2402_vm12, %v2412_v9, %v2413_v53 }
 0x1b9   :  { %v2470_v48 = vmax.f32 %v2468_v31, %v2469_v16  ;;  %v2247_v12 = vadd.f32 %v2212_v58, %v4307_v47  ;;  %v2209_v26 = vsel %vm1404_vm11, %v2207_v22, %v2208_v28  ;;  %v2246_v17 = vadd.f32 %v2208_v28, %v4311_v2 }
 0x1ba   :  { %v2462_v30 = vmax.f32 %v2460_v33, %v2461_v23  ;;  %v2450_v36 = vadd.f32 %v2413_v53, %v2248_v56  ;;  %v2245_v54 = vadd.f32 %v2209_v26, %v4309_v21  ;;  %v2411_v42 = vsel %vm2402_vm12, %v2409_v44, %v2410_v3 }
 0x1bb   :  { %v2471_v52 = vrot.slane %v2470_v48, 2  ;;  %v2449_v32 = vadd.f32 %v2414_v51, %v2247_v12  ;;  %v3507_v24 = vpop.f32.mrb[88].mxu0  ;;  %v2448_v47 = vadd.f32 %v2410_v3, %v2246_v17  ;;  %v3531_v59 = vpop.f32.mrb[88].mxu1 }
 0x1bc   :  { %v2463_v6 = vrot.slane %v2462_v30, 2  ;;  %v2483_v41 = vsel %vm2402_vm12, %v2450_v36, -inf  ;;  %v2447_v19 = vadd.f32 %v2411_v42, %v2245_v54  ;;  %v2154_v55 = vpop.f32.mrb[89].mxu0  ;;  %v2216_v63 = vrot.slane %v3507_v24, 3  ;;  %v2355_v60 = vpop.f32.mrb[89].mxu1 }
 0x1bd   :  { %v2472_v25 = vmax.f32 %v2470_v48, %v2471_v52  ;;  %v2484_v14 = vmax.f32 %v2449_v32, %v2483_v41  ;;  %v2418_v29 = vrot.slane %v3531_v59, 4  ;;  %v3508_v21 = vpop.f32.mrb[90].mxu0  ;;  %v2475_v2 = vsel %vm2402_vm12, %v2448_v47, -inf  ;;  %v3532_v50 = vpop.f32.mrb[90].mxu1 }
 0x1be   :  { %v2464_v0 = vmax.f32 %v2462_v30, %v2463_v6  ;;  %v2213_v1 = vrot.slane %v2154_v55, 3  ;;  %v2415_v18 = vrot.slane %v2355_v60, 4  ;;  %v2157_v49 = vpop.f32.mrb[91].mxu0  ;;  %v2476_v8 = vmax.f32 %v2447_v19, %v2475_v2  ;;  %v2358_v31 = vpop.f32.mrb[91].mxu1 }
 0x1bf   :  { %v2473_v4 = vrot.slane %v2472_v25, 1  ;;  %v2485_v43 = vrot.slane %v2484_v14, 4  ;;  %v2217_v61 = vrot.slane %v3508_v21, 3  ;;  %v2419_v9 = vrot.slane %v3532_v50, 4 }
 0x1c0   :  { %v2465_v34 = vrot.slane %v2464_v0, 1  ;;  %v2214_v10 = vrot.slane %v2157_v49, 3  ;;  %v2416_v35 = vrot.slane %v2358_v31, 4  ;;  %v2477_v22 = vrot.slane %v2476_v8, 4 }
 0x1c1   :  { %v2474_v33 = vmax.f32 %v2472_v25, %v2473_v4  ;;  %v2486_v13 = vmax.f32 %v2484_v14, %v2485_v43  ;;  %v2218_v20 = vsel %vm1404_vm11, %v2216_v63, %v2217_v61  ;;  %v2252_v16 = vadd.f32 %v2217_v61, %v4320_v57 }
 0x1c2   :  { %v2466_v39 = vmax.f32 %v2464_v0, %v2465_v34  ;;  %v2251_v27 = vadd.f32 %v2218_v20, %v4324_v38  ;;  %v2420_v44 = vsel %vm2402_vm12, %v2418_v29, %v2419_v9  ;;  %v2478_v28 = vmax.f32 %v2476_v8, %v2477_v22 }
 0x1c3   :  { %v2487_v53 = vrot.slane %v2486_v13, 2  ;;  %v2215_v15 = vsel %vm1404_vm11, %v2213_v1, %v2214_v10  ;;  %v2250_v23 = vadd.f32 %v2214_v10, %v4326_v11  ;;  %v3511_v58 = vpop.f32.mrb[92].mxu0  ;;  %v2454_v48 = vadd.f32 %v2419_v9, %v2252_v16  ;;  %v3535_v51 = vpop.f32.mrb[92].mxu1 }
 0x1c4   :  { %v2570_v56 = vsel %vm2531_vm3, %v2474_v33, %v2466_v39  ;;  %v2453_v3 = vadd.f32 %v2420_v44, %v2251_v27  ;;  %v2249_v12 = vadd.f32 %v2215_v15, %v4328_v7  ;;  %v2170_v26 = vpop.f32.mrb[93].mxu0  ;;  %v2479_v30 = vrot.slane %v2478_v28, 2  ;;  %v2371_v54 = vpop.f32.mrb[93].mxu1 }
 0x1c5   :  { %v2488_v38 = vmax.f32 %v2486_v13, %v2487_v53  ;;  %v2417_v57 = vsel %vm2402_vm12, %v2415_v18, %v2416_v35  ;;  %v2452_v36 = vadd.f32 %v2416_v35, %v2250_v23  ;;  %v3512_v17 = vpop.f32.mrb[94].mxu0  ;;  %v2499_v52 = vsel %vm2402_vm12, %v2454_v48, -inf  ;;  %v3536_v24 = vpop.f32.mrb[94].mxu1 }
 0x1c6   :  { %v2451_v32 = vadd.f32 %v2417_v57, %v2249_v12  ;;  %v2222_v11 = vrot.slane %v3511_v58, 3  ;;  %v2424_v42 = vrot.slane %v3535_v51, 4  ;;  %v2173_v6 = vpop.f32.mrb[95].mxu0  ;;  %v2480_v19 = vmax.f32 %v2478_v28, %v2479_v30  ;;  %v2374_v59 = vpop.f32.mrb[95].mxu1 }
 0x1c7   :  { %v2489_v41 = vrot.slane %v2488_v38, 1  ;;  %v2500_v47 = vmax.f32 %v2453_v3, %v2499_v52  ;;  %v2491_v7 = vsel %vm2402_vm12, %v2452_v36, -inf  ;;  %v2219_v25 = vrot.slane %v2170_v26, 3 }
 0x1c8   :  { %v2492_v55 = vmax.f32 %v2451_v32, %v2491_v7  ;;  %v2421_v14 = vrot.slane %v2371_v54, 4  ;;  %v2223_v63 = vrot.slane %v3512_v17, 3  ;;  %v2481_v60 = vrot.slane %v2480_v19, 1 }
 0x1c9   :  { %v2490_v29 = vmax.f32 %v2488_v38, %v2489_v41  ;;  %v2501_v21 = vrot.slane %v2500_v47, 4  ;;  %v2425_v0 = vrot.slane %v3536_v24, 4  ;;  %v2220_v50 = vrot.slane %v2173_v6, 3 }
 0x1ca   :  { %v2493_v2 = vrot.slane %v2492_v55, 4  ;;  %v2224_v1 = vsel %vm1404_vm11, %v2222_v11, %v2223_v63  ;;  %v2256_v18 = vadd.f32 %v2223_v63, %v4336_v62  ;;  %v2482_v49 = vmax.f32 %v2480_v19, %v2481_v60 }
 0x1cb   :  { %v2502_v4 = vmax.f32 %v2500_v47, %v2501_v21  ;;  %v2255_v43 = vadd.f32 %v2224_v1, %v4340_v45  ;;  %v2426_v8 = vsel %vm2402_vm12, %v2424_v42, %v2425_v0  ;;  %v2221_v34 = vsel %vm1404_vm11, %v2219_v25, %v2220_v50 }
 0x1cc   :  { %v2494_v61 = vmax.f32 %v2492_v55, %v2493_v2  ;;  %v2458_v31 = vadd.f32 %v2425_v0, %v2256_v18  ;;  %v2254_v9 = vadd.f32 %v2220_v50, %v4342_v46  ;;  %v2571_v10 = vsel %vm2533_vm4, %v2482_v49, %v2570_v56 }
 0x1cd   :  { %v2503_v35 = vrot.slane %v2502_v4, 2  ;;  %v2457_v33 = vadd.f32 %v2426_v8, %v2255_v43  ;;  %v2253_v13 = vadd.f32 %v2221_v34, %v4344_v37  ;;  %v2572_v22 = vsel %vm2535_vm5, %v2490_v29, %v2571_v10 }
 0x1ce   :  { %v2495_v62 = vrot.slane %v2494_v61, 2  ;;  %v2515_v20 = vsel %vm2402_vm12, %v2458_v31, -inf  ;;  %v2422_v45 = vrot.slane %v2374_v59, 4  ;;  %v2590_v54 = vsub.s32 2, %v4252_v5  ;;  %v3049_v5 = vld [vmem:[%s4414_s4] ss:$0 sm:$0xff] }
 0x1cf   :  { %v2504_v39 = vmax.f32 %v2502_v4, %v2503_v35  ;;  %v2516_v27 = vmax.f32 %v2457_v33, %v2515_v20 }
 0x1d0   :  { %v2496_v16 = vmax.f32 %v2494_v61, %v2495_v62  ;;  %v2423_v44 = vsel %vm2402_vm12, %v2421_v14, %v2422_v45  ;;  %v2456_v53 = vadd.f32 %v2422_v45, %v2254_v9  ;;  %v2591_v11 = vrot.slane %v4277_v40, %v2590_v54 }
 0x1d1   :  { %v2505_v28 = vrot.slane %v2504_v39, 1  ;;  %v2517_v46 = vrot.slane %v2516_v27, 4  ;;  %v2455_v15 = vadd.f32 %v2423_v44, %v2253_v13 }
 0x1d2   :  { %v2497_v23 = vrot.slane %v2496_v16, 1  ;;  %v2507_v58 = vsel %vm2402_vm12, %v2456_v53, -inf }
 0x1d3   :  { %v2518_v56 = vmax.f32 %v2516_v27, %v2517_v46  ;;  %v2508_v37 = vmax.f32 %v2455_v15, %v2507_v58  ;;  %v2506_v48 = vmax.f32 %v2504_v39, %v2505_v28 }
 0x1d4   :  { %v2498_v3 = vmax.f32 %v2496_v16, %v2497_v23 }
 0x1d5   :  { %v2519_v12 = vrot.slane %v2518_v56, 2  ;;  %v2509_v51 = vrot.slane %v2508_v37, 4 }
 0x1d6   :  { %v2573_v26 = vsel %vm2537_vm6, %v2498_v3, %v2572_v22 }
 0x1d7   :  { %v2510_v38 = vmax.f32 %v2508_v37, %v2509_v51  ;;  %v2574_v30 = vsel %vm2539_vm7, %v2506_v48, %v2573_v26  ;;  %v2520_v57 = vmax.f32 %v2518_v56, %v2519_v12 }
 0x1d9   :  { %v2511_v36 = vrot.slane %v2510_v38, 2  ;;  %v2521_v52 = vrot.slane %v2520_v57, 1 }
 0x1db   :  { %v2512_v17 = vmax.f32 %v2510_v38, %v2511_v36  ;;  %v2522_v24 = vmax.f32 %v2520_v57, %v2521_v52 }
 0x1dd   :  { %v2513_v32 = vrot.slane %v2512_v17, 1 }
 0x1df   :  { %v2514_v42 = vmax.f32 %v2512_v17, %v2513_v32 }
 0x1e1   :  { %v2575_v6 = vsel %vm2541_vm8, %v2514_v42, %v2574_v30 }
 0x1e2   :  { %v2576_v41 = vsel %vm2543_vm9, %v2522_v24, %v2575_v6 }
 0x1e3   :  { %v2597_v19 = vadd.f32 %v2591_v11, %v2576_v41 }
 0x1e5   :  { %v2600_v47 = vpack.c.bf16 %v2597_v19, %v2597_v19 }
 0x1e7   :  { %3554 = vmatmul.mubr.bf16.vlgmr.msra.gmra.mrb[96].mxu1 %v2600_v47 }
 0x276   :  { %v3234_v7 = vpop.f32.mrb[96].mxu0 }
 0x277   :  { %v3235_v59 = vpop.f32.mrb[97].mxu0 }
 0x278   :  { %v3236_v55 = vadd.f32 %v3235_v59, %v3234_v7  ;;  %v3237_v25 = vpop.f32.mrb[98].mxu0 }
 0x279   :  { %v3238_v14 = vpop.f32.mrb[99].mxu0 }
 0x27a   :  { %v2835_v40 = vadd.f32 %v3236_v55, %v3049_v5 }
 0x2ba   :  { %v2874_v63 = vpop.f32.mrb[96].mxu1 }
 0x2bb   :  { %v2875_v29 = vadd.f32 %v2874_v63, %v2835_v40  ;;  %v3555_v60 = vpop.f32.mrb[97].mxu1 }
 0x2bc   :  { %v2877_v21 = vpop.f32.mrb[98].mxu1 }
 0x2bd   :  { %2880 = vst [vmem:[#allocation7] sm:$0xff] %v2875_v29  ;;  %v3556_v0 = vpop.f32.mrb[99].mxu1 }
 0x2be   :  { %3701 = shalt.err (!%p3698_p6)
}
 0x2bf   :  { %s3702_s4 = scalar_lea.hbm %s4415_s5, 128 }
 0x2c0   :  { %p3703_p7 = scmp.ne.s32.totalorder %s4415_s5, %s3702_s4  ;;  %p3706_p8 = scmp.lt.u32.totalorder %s3702_s4, %s4415_s5 }
 0x2c2   :  { %p3708_p9 = pnand %p3706_p8, %p3703_p7 }
 0x2c4   :  { %3711 = shalt.err (!%p3708_p9)
}
 0x2c5   :  { %2890 = dma.vmem_to_hbm [thread:$0]  %s2888_s13, 128, %s4415_s5, [#allocation4]  }
 0x2c6   :  { %3716 = dma.done.wait [#allocation4], 128  }
 0x2c7   :  { %3717 = vsyncadd [#allocation4], 4294967168 }
 0x2c8   :  { %2894 = vsyncpa [#allocation3], 1 }
 0x2c9   :  { %2895 = vsyncpa [#allocation6], 1 }
 0x2ca   :  { %2896 = vsyncpa [#allocation4], 1 }

</bundles_post_ra>
